<compile_context>
chip_gen: v7x
topology: tpu7x:2x2x1
jax: 0.10.0
libtpu: 0.0.40
codegen_flags: <defaults>
</compile_context>

<pallas_src>
from functools import partial

import jax
import jax.numpy as jnp
from jax.experimental import pallas as pl
from jax.experimental.pallas import tpu as pltpu


# ---------------------------------------------------------------------------
# Fused kernel: all 6 conv layers, activations resident in a VMEM scratch ref.
# ---------------------------------------------------------------------------
def _make_encoder_kernel(batch, l0, layer_dims, c_max):
    """layer_dims: tuple of (c_in, c_out) per layer (static Python ints)."""
    rows_per_sample = l0 + 2                # 1 zero row of pad on each side
    n_layers = len(layer_dims)

    def kernel(x_ref, w_ref, b_ref, o_ref, y_scr):
        # x_ref : (B, C0, L0)   NCL input, loaded whole into VMEM
        # w_ref : (n_layers, 4*c_max, c_max) zero-padded per-layer weights
        # b_ref : (n_layers, c_max)          zero-padded biases
        # o_ref : (B, C_last, L0 / 2**n)     NCL output
        # y_scr : (B*(L0+2), c_max) VMEM scratch holding the current activation,
        #         channels-last, with one zero border row per sample on each side.

        # Zero the scratch once: provides the conv's pad=1 rows for every layer
        # and the zero lanes for layer-0's channel padding (4 -> c_max).
        y_scr[...] = jnp.zeros(y_scr.shape, y_scr.dtype)

        # Layer-0 input relayout: NCL -> channels-last rows in the scratch.
        c0 = layer_dims[0][0]
        for b in range(batch):
            base = b * rows_per_sample
            xt = jnp.transpose(x_ref[b], (1, 0))               # (L0, C0)
            y_scr[pl.ds(base + 1, l0), 0:c0] = xt               # lanes c0..c_max-1 stay 0

        l_in = l0
        for l, (c_in, c_out) in enumerate(layer_dims):
            l_out = l_in // 2

            # Build the (B*l_out, 4*c_max) patch: 4 strided sublane reads per
            # sample (tap k -> padded time index 2t+k), concatenated along lanes,
            # samples stacked along rows.  No selection matmuls, no HBM traffic.
            per_sample = []
            for b in range(batch):
                base = b * rows_per_sample
                taps = [y_scr[pl.ds(base + k, l_out, stride=2), :] for k in range(4)]
                per_sample.append(jnp.concatenate(taps, axis=-1))      # (l_out, 4*c_max)
            patch = per_sample[0] if batch == 1 else jnp.concatenate(per_sample, axis=0)

            # ONE MXU matmul per layer (K = 4*c_max = 128), + bias.
            acc = jnp.dot(patch, w_ref[l], preferred_element_type=jnp.float32)
            acc = acc + b_ref[l:l + 1, :]

            if l < n_layers - 1:
                acc = jnp.maximum(acc, 0.0)                             # ReLU
                # Write the next layer's input back into the scratch, plus one
                # explicit zero row so the right-hand conv pad stays zero (the
                # row would otherwise contain stale data from this layer's input).
                for b in range(batch):
                    base = b * rows_per_sample
                    y_scr[pl.ds(base + 1, l_out), :] = acc[b * l_out:(b + 1) * l_out, :]
                    y_scr[pl.ds(base + 1 + l_out, 1), :] = jnp.zeros((1, c_max), jnp.float32)
            else:
                # Final layer: emit NCL (B, c_out, l_out) directly -- no wrapper
                # transpose.  Columns >= c_out are exactly zero (zero-padded
                # weights/bias) and are simply dropped by the static slice.
                for b in range(batch):
                    blk = acc[b * l_out:(b + 1) * l_out, 0:c_out]       # (l_out, c_out)
                    o_ref[b] = jnp.transpose(blk, (1, 0)).astype(o_ref.dtype)

            l_in = l_out

    return kernel


# ---------------------------------------------------------------------------
# One-time parameter packing: 2 tensors for the whole network.
# ---------------------------------------------------------------------------
def pack_encoder_params(params):
    """params: list of (w_torch (C_out, C_in, 4), bias (C_out,)) per layer.

    Returns (w_all, b_all, layer_dims, c_max):
      w_all : (n_layers, 4*c_max, c_max)  w_all[l, k*c_max + ci, co] = W[co, ci, k]
      b_all : (n_layers, c_max)
    Zero padding is numerically exact (padded lanes of the patch are zero).
    """
    n_layers = len(params)
    c_max = max(max(w.shape[0], w.shape[1]) for w, _ in params)
    w_all = jnp.zeros((n_layers, 4 * c_max, c_max), jnp.float32)
    b_all = jnp.zeros((n_layers, c_max), jnp.float32)
    for l, (w, b) in enumerate(params):
        c_out, c_in, k = w.shape
        assert k == 4
        for t in range(4):
            w_all = w_all.at[l, t * c_max: t * c_max + c_in, :c_out].set(w[:, :, t].T)
        b_all = b_all.at[l, :c_out].set(b)
    layer_dims = tuple((w.shape[1], w.shape[0]) for w, _ in params)
    return w_all, b_all, layer_dims, c_max


def init_encoder_params(key, in_dim, h_dim, latent_dim):
    """Deterministic PyTorch-style uniform init for the 6 Conv1d layers (torch layout)."""
    dims = [in_dim, h_dim, h_dim, h_dim, h_dim, h_dim, latent_dim]
    params = []
    for i in range(6):
        c_in, c_out = dims[i], dims[i + 1]
        key, kw, kb = jax.random.split(key, 3)
        bound = 1.0 / jnp.sqrt(jnp.float32(c_in * 4))
        w = jax.random.uniform(kw, (c_out, c_in, 4), jnp.float32, -bound, bound)
        b = jax.random.uniform(kb, (c_out,), jnp.float32, -bound, bound)
        params.append((w, b))
    return params


# ---------------------------------------------------------------------------
# Forward: exactly one pallas_call, no wrapper relayout ops.
# ---------------------------------------------------------------------------
@partial(jax.jit, static_argnames=("layer_dims", "c_max"))
def encoder_forward(x_ncl, w_all, b_all, layer_dims, c_max):
    """x_ncl: (B, in_dim, L) NCL like PyTorch.  Returns (B, latent_dim, L / 2**6) NCL."""
    b_sz, _, l0 = x_ncl.shape
    n_layers = len(layer_dims)
    assert l0 % (2 ** n_layers) == 0, "sequence length must be divisible by 2**n_layers"
    l_final = l0 // (2 ** n_layers)
    c_final = layer_dims[-1][1]

    kernel = _make_encoder_kernel(b_sz, l0, layer_dims, c_max)
    return pl.pallas_call(
        kernel,
        out_shape=jax.ShapeDtypeStruct((b_sz, c_final, l_final), x_ncl.dtype),
        # 3 input operands (x, packed W, packed b), all full-array VMEM blocks.
        scratch_shapes=[pltpu.VMEM((b_sz * (l0 + 2), c_max), jnp.float32)],
    )(x_ncl, w_all, b_all)


# ---------------------------------------------------------------------------
# Pure-JAX reference (lax conv) for correctness checking.
# ---------------------------------------------------------------------------
def encoder_reference(params, x_ncl):
    x = x_ncl
    n_layers = len(params)
    for i, (w, b) in enumerate(params):
        x = jax.lax.conv_general_dilated(
            x, w, window_strides=(2,), padding=[(1, 1)],
            dimension_numbers=("NCH", "OIH", "NCH"))
        x = x + b[None, :, None]
        if i < n_layers - 1:
            x = jnp.maximum(x, 0.0)
    return x


if __name__ == "__main__":
    in_dim, h_dim, latent_dim = 4, 32, 8
    batch, length = 2, 128                       # 128 -> 2 after six stride-2 convs

    key = jax.random.PRNGKey(0)
    key, kx = jax.random.split(key)
    x = jax.random.normal(kx, (batch, in_dim, length), jnp.float32)
    params = init_encoder_params(key, in_dim, h_dim, latent_dim)
    w_all, b_all, layer_dims, c_max = pack_encoder_params(params)   # one-time relayout

    out = jax.block_until_ready(encoder_forward(x, w_all, b_all, layer_dims, c_max))
    ref = jax.block_until_ready(encoder_reference(params, x))

    assert out.shape == (batch, latent_dim, length // 64), out.shape
    max_err = float(jnp.max(jnp.abs(out - ref)))
    assert jnp.allclose(out, ref, atol=5e-4, rtol=5e-4), max_err

    print("KERNEL_OK")
</pallas_src>

<mosaic_0001>
module attributes {stable_mosaic.version = 11 : i64} {
  func.func @kernel(%arg0: memref<2x4x128xf32, #tpu.memory_space<vmem>>, %arg1: memref<6x128x32xf32, #tpu.memory_space<vmem>>, %arg2: memref<6x32xf32, #tpu.memory_space<vmem>>, %arg3: memref<2x8x2xf32, #tpu.memory_space<vmem>>, %arg4: memref<260x32xf32, #tpu.memory_space<vmem>>) attributes {dimension_semantics = [], scalar_prefetch = 0 : i64, scratch_operands = 1 : i64, tpu.core_type = #tpu.core_type<tc>} {
    %cst = arith.constant 0.000000e+00 : f32
    %0 = vector.broadcast %cst : f32 to vector<260x32xf32>
    %c0 = arith.constant 0 : index
    %c0_0 = arith.constant 0 : index
    %1 = vector.load %arg4[%c0, %c0_0] : memref<260x32xf32, #tpu.memory_space<vmem>>, vector<260x32xf32>
    tpu.vector_store %arg4[%c0, %c0_0], %0 {strides = array<i32>} : memref<260x32xf32, #tpu.memory_space<vmem>>, vector<260x32xf32>,
    %c0_1 = arith.constant 0 : index
    %c0_2 = arith.constant 0 : index
    %c0_3 = arith.constant 0 : index
    %2 = vector.load %arg0[%c0_1, %c0_2, %c0_3] : memref<2x4x128xf32, #tpu.memory_space<vmem>>, vector<1x4x128xf32>
    %3 = vector.shape_cast %2 : vector<1x4x128xf32> to vector<4x128xf32>
    %4 = tpu.transpose %3, [1, 0] : vector<4x128xf32> -> vector<128x4xf32>
    %c1 = arith.constant 1 : index
    %c0_4 = arith.constant 0 : index
    %5 = vector.load %arg4[%c1, %c0_4] : memref<260x32xf32, #tpu.memory_space<vmem>>, vector<128x4xf32>
    tpu.vector_store %arg4[%c1, %c0_4], %4 {strides = array<i32>} : memref<260x32xf32, #tpu.memory_space<vmem>>, vector<128x4xf32>,
    %c1_5 = arith.constant 1 : index
    %c0_6 = arith.constant 0 : index
    %c0_7 = arith.constant 0 : index
    %6 = vector.load %arg0[%c1_5, %c0_6, %c0_7] : memref<2x4x128xf32, #tpu.memory_space<vmem>>, vector<1x4x128xf32>
    %7 = vector.shape_cast %6 : vector<1x4x128xf32> to vector<4x128xf32>
    %8 = tpu.transpose %7, [1, 0] : vector<4x128xf32> -> vector<128x4xf32>
    %c131 = arith.constant 131 : index
    %c0_8 = arith.constant 0 : index
    %9 = vector.load %arg4[%c131, %c0_8] : memref<260x32xf32, #tpu.memory_space<vmem>>, vector<128x4xf32>
    tpu.vector_store %arg4[%c131, %c0_8], %8 {strides = array<i32>} : memref<260x32xf32, #tpu.memory_space<vmem>>, vector<128x4xf32>,
    %c0_9 = arith.constant 0 : index
    %c0_10 = arith.constant 0 : index
    %10 = tpu.strided_load %arg4[%c0_9, %c0_10] {strides = array<i32: 2, 1>} : memref<260x32xf32, #tpu.memory_space<vmem>>, vector<64x32xf32>
    %c1_11 = arith.constant 1 : index
    %c0_12 = arith.constant 0 : index
    %11 = tpu.strided_load %arg4[%c1_11, %c0_12] {strides = array<i32: 2, 1>} : memref<260x32xf32, #tpu.memory_space<vmem>>, vector<64x32xf32>
    %c2 = arith.constant 2 : index
    %c0_13 = arith.constant 0 : index
    %12 = tpu.strided_load %arg4[%c2, %c0_13] {strides = array<i32: 2, 1>} : memref<260x32xf32, #tpu.memory_space<vmem>>, vector<64x32xf32>
    %c3 = arith.constant 3 : index
    %c0_14 = arith.constant 0 : index
    %13 = tpu.strided_load %arg4[%c3, %c0_14] {strides = array<i32: 2, 1>} : memref<260x32xf32, #tpu.memory_space<vmem>>, vector<64x32xf32>
    %14 = tpu.concatenate %10, %11, %12, %13 in 1 : vector<64x32xf32>, vector<64x32xf32>, vector<64x32xf32>, vector<64x32xf32> -> vector<64x128xf32>
    %c130 = arith.constant 130 : index
    %c0_15 = arith.constant 0 : index
    %15 = tpu.strided_load %arg4[%c130, %c0_15] {strides = array<i32: 2, 1>} : memref<260x32xf32, #tpu.memory_space<vmem>>, vector<64x32xf32>
    %c131_16 = arith.constant 131 : index
    %c0_17 = arith.constant 0 : index
    %16 = tpu.strided_load %arg4[%c131_16, %c0_17] {strides = array<i32: 2, 1>} : memref<260x32xf32, #tpu.memory_space<vmem>>, vector<64x32xf32>
    %c132 = arith.constant 132 : index
    %c0_18 = arith.constant 0 : index
    %17 = tpu.strided_load %arg4[%c132, %c0_18] {strides = array<i32: 2, 1>} : memref<260x32xf32, #tpu.memory_space<vmem>>, vector<64x32xf32>
    %c133 = arith.constant 133 : index
    %c0_19 = arith.constant 0 : index
    %18 = tpu.strided_load %arg4[%c133, %c0_19] {strides = array<i32: 2, 1>} : memref<260x32xf32, #tpu.memory_space<vmem>>, vector<64x32xf32>
    %19 = tpu.concatenate %15, %16, %17, %18 in 1 : vector<64x32xf32>, vector<64x32xf32>, vector<64x32xf32>, vector<64x32xf32> -> vector<64x128xf32>
    %20 = tpu.concatenate %14, %19 in 0 : vector<64x128xf32>, vector<64x128xf32> -> vector<128x128xf32>
    %c0_20 = arith.constant 0 : index
    %c0_21 = arith.constant 0 : index
    %c0_22 = arith.constant 0 : index
    %21 = vector.load %arg1[%c0_20, %c0_21, %c0_22] : memref<6x128x32xf32, #tpu.memory_space<vmem>>, vector<1x128x32xf32>
    %22 = vector.shape_cast %21 : vector<1x128x32xf32> to vector<128x32xf32>
    %cst_23 = arith.constant dense<0.000000e+00> : vector<128x32xf32>
    %23 = tpu.matmul %20, %22, %cst_23 {dimension_numbers = #tpu.dot_dimension_numbers<[1], [0], [0], [1], [0, 0, 1, 1], [], []>} : vector<128x128xf32>, vector<128x32xf32>, vector<128x32xf32> -> vector<128x32xf32>
    %c0_24 = arith.constant 0 : index
    %c0_25 = arith.constant 0 : index
    %24 = vector.load %arg2[%c0_24, %c0_25] : memref<6x32xf32, #tpu.memory_space<vmem>>, vector<1x32xf32>
    %25 = vector.broadcast %24 : vector<1x32xf32> to vector<128x32xf32>
    %26 = arith.addf %23, %25 : vector<128x32xf32>
    %cst_26 = arith.constant 0.000000e+00 : f32
    %27 = vector.broadcast %cst_26 : f32 to vector<128x32xf32>
    %28 = arith.maximumf %26, %27 : vector<128x32xf32>
    %29 = vector.extract_strided_slice %28 {offsets = [0, 0], sizes = [64, 32], strides = [1, 1]} : vector<128x32xf32> to vector<64x32xf32>
    %c1_27 = arith.constant 1 : index
    %c0_28 = arith.constant 0 : index
    %30 = vector.load %arg4[%c1_27, %c0_28] : memref<260x32xf32, #tpu.memory_space<vmem>>, vector<64x32xf32>
    tpu.vector_store %arg4[%c1_27, %c0_28], %29 {strides = array<i32>} : memref<260x32xf32, #tpu.memory_space<vmem>>, vector<64x32xf32>,
    %cst_29 = arith.constant 0.000000e+00 : f32
    %31 = vector.broadcast %cst_29 : f32 to vector<1x32xf32>
    %c65 = arith.constant 65 : index
    %c0_30 = arith.constant 0 : index
    %32 = vector.load %arg4[%c65, %c0_30] : memref<260x32xf32, #tpu.memory_space<vmem>>, vector<1x32xf32>
    tpu.vector_store %arg4[%c65, %c0_30], %31 {strides = array<i32>} : memref<260x32xf32, #tpu.memory_space<vmem>>, vector<1x32xf32>,
    %33 = vector.extract_strided_slice %28 {offsets = [64, 0], sizes = [64, 32], strides = [1, 1]} : vector<128x32xf32> to vector<64x32xf32>
    %c131_31 = arith.constant 131 : index
    %c0_32 = arith.constant 0 : index
    %34 = vector.load %arg4[%c131_31, %c0_32] : memref<260x32xf32, #tpu.memory_space<vmem>>, vector<64x32xf32>
    tpu.vector_store %arg4[%c131_31, %c0_32], %33 {strides = array<i32>} : memref<260x32xf32, #tpu.memory_space<vmem>>, vector<64x32xf32>,
    %cst_33 = arith.constant 0.000000e+00 : f32
    %35 = vector.broadcast %cst_33 : f32 to vector<1x32xf32>
    %c195 = arith.constant 195 : index
    %c0_34 = arith.constant 0 : index
    %36 = vector.load %arg4[%c195, %c0_34] : memref<260x32xf32, #tpu.memory_space<vmem>>, vector<1x32xf32>
    tpu.vector_store %arg4[%c195, %c0_34], %35 {strides = array<i32>} : memref<260x32xf32, #tpu.memory_space<vmem>>, vector<1x32xf32>,
    %c0_35 = arith.constant 0 : index
    %c0_36 = arith.constant 0 : index
    %37 = tpu.strided_load %arg4[%c0_35, %c0_36] {strides = array<i32: 2, 1>} : memref<260x32xf32, #tpu.memory_space<vmem>>, vector<32x32xf32>
    %c1_37 = arith.constant 1 : index
    %c0_38 = arith.constant 0 : index
    %38 = tpu.strided_load %arg4[%c1_37, %c0_38] {strides = array<i32: 2, 1>} : memref<260x32xf32, #tpu.memory_space<vmem>>, vector<32x32xf32>
    %c2_39 = arith.constant 2 : index
    %c0_40 = arith.constant 0 : index
    %39 = tpu.strided_load %arg4[%c2_39, %c0_40] {strides = array<i32: 2, 1>} : memref<260x32xf32, #tpu.memory_space<vmem>>, vector<32x32xf32>
    %c3_41 = arith.constant 3 : index
    %c0_42 = arith.constant 0 : index
    %40 = tpu.strided_load %arg4[%c3_41, %c0_42] {strides = array<i32: 2, 1>} : memref<260x32xf32, #tpu.memory_space<vmem>>, vector<32x32xf32>
    %41 = tpu.concatenate %37, %38, %39, %40 in 1 : vector<32x32xf32>, vector<32x32xf32>, vector<32x32xf32>, vector<32x32xf32> -> vector<32x128xf32>
    %c130_43 = arith.constant 130 : index
    %c0_44 = arith.constant 0 : index
    %42 = tpu.strided_load %arg4[%c130_43, %c0_44] {strides = array<i32: 2, 1>} : memref<260x32xf32, #tpu.memory_space<vmem>>, vector<32x32xf32>
    %c131_45 = arith.constant 131 : index
    %c0_46 = arith.constant 0 : index
    %43 = tpu.strided_load %arg4[%c131_45, %c0_46] {strides = array<i32: 2, 1>} : memref<260x32xf32, #tpu.memory_space<vmem>>, vector<32x32xf32>
    %c132_47 = arith.constant 132 : index
    %c0_48 = arith.constant 0 : index
    %44 = tpu.strided_load %arg4[%c132_47, %c0_48] {strides = array<i32: 2, 1>} : memref<260x32xf32, #tpu.memory_space<vmem>>, vector<32x32xf32>
    %c133_49 = arith.constant 133 : index
    %c0_50 = arith.constant 0 : index
    %45 = tpu.strided_load %arg4[%c133_49, %c0_50] {strides = array<i32: 2, 1>} : memref<260x32xf32, #tpu.memory_space<vmem>>, vector<32x32xf32>
    %46 = tpu.concatenate %42, %43, %44, %45 in 1 : vector<32x32xf32>, vector<32x32xf32>, vector<32x32xf32>, vector<32x32xf32> -> vector<32x128xf32>
    %47 = tpu.concatenate %41, %46 in 0 : vector<32x128xf32>, vector<32x128xf32> -> vector<64x128xf32>
    %c1_51 = arith.constant 1 : index
    %c0_52 = arith.constant 0 : index
    %c0_53 = arith.constant 0 : index
    %48 = vector.load %arg1[%c1_51, %c0_52, %c0_53] : memref<6x128x32xf32, #tpu.memory_space<vmem>>, vector<1x128x32xf32>
    %49 = vector.shape_cast %48 : vector<1x128x32xf32> to vector<128x32xf32>
    %cst_54 = arith.constant dense<0.000000e+00> : vector<64x32xf32>
    %50 = tpu.matmul %47, %49, %cst_54 {dimension_numbers = #tpu.dot_dimension_numbers<[1], [0], [0], [1], [0, 0, 1, 1], [], []>} : vector<64x128xf32>, vector<128x32xf32>, vector<64x32xf32> -> vector<64x32xf32>
    %c1_55 = arith.constant 1 : index
    %c0_56 = arith.constant 0 : index
    %51 = vector.load %arg2[%c1_55, %c0_56] : memref<6x32xf32, #tpu.memory_space<vmem>>, vector<1x32xf32>
    %52 = vector.broadcast %51 : vector<1x32xf32> to vector<64x32xf32>
    %53 = arith.addf %50, %52 : vector<64x32xf32>
    %cst_57 = arith.constant 0.000000e+00 : f32
    %54 = vector.broadcast %cst_57 : f32 to vector<64x32xf32>
    %55 = arith.maximumf %53, %54 : vector<64x32xf32>
    %56 = vector.extract_strided_slice %55 {offsets = [0, 0], sizes = [32, 32], strides = [1, 1]} : vector<64x32xf32> to vector<32x32xf32>
    %c1_58 = arith.constant 1 : index
    %c0_59 = arith.constant 0 : index
    %57 = vector.load %arg4[%c1_58, %c0_59] : memref<260x32xf32, #tpu.memory_space<vmem>>, vector<32x32xf32>
    tpu.vector_store %arg4[%c1_58, %c0_59], %56 {strides = array<i32>} : memref<260x32xf32, #tpu.memory_space<vmem>>, vector<32x32xf32>,
    %cst_60 = arith.constant 0.000000e+00 : f32
    %58 = vector.broadcast %cst_60 : f32 to vector<1x32xf32>
    %c33 = arith.constant 33 : index
    %c0_61 = arith.constant 0 : index
    %59 = vector.load %arg4[%c33, %c0_61] : memref<260x32xf32, #tpu.memory_space<vmem>>, vector<1x32xf32>
    tpu.vector_store %arg4[%c33, %c0_61], %58 {strides = array<i32>} : memref<260x32xf32, #tpu.memory_space<vmem>>, vector<1x32xf32>,
    %60 = vector.extract_strided_slice %55 {offsets = [32, 0], sizes = [32, 32], strides = [1, 1]} : vector<64x32xf32> to vector<32x32xf32>
    %c131_62 = arith.constant 131 : index
    %c0_63 = arith.constant 0 : index
    %61 = vector.load %arg4[%c131_62, %c0_63] : memref<260x32xf32, #tpu.memory_space<vmem>>, vector<32x32xf32>
    tpu.vector_store %arg4[%c131_62, %c0_63], %60 {strides = array<i32>} : memref<260x32xf32, #tpu.memory_space<vmem>>, vector<32x32xf32>,
    %cst_64 = arith.constant 0.000000e+00 : f32
    %62 = vector.broadcast %cst_64 : f32 to vector<1x32xf32>
    %c163 = arith.constant 163 : index
    %c0_65 = arith.constant 0 : index
    %63 = vector.load %arg4[%c163, %c0_65] : memref<260x32xf32, #tpu.memory_space<vmem>>, vector<1x32xf32>
    tpu.vector_store %arg4[%c163, %c0_65], %62 {strides = array<i32>} : memref<260x32xf32, #tpu.memory_space<vmem>>, vector<1x32xf32>,
    %c0_66 = arith.constant 0 : index
    %c0_67 = arith.constant 0 : index
    %64 = tpu.strided_load %arg4[%c0_66, %c0_67] {strides = array<i32: 2, 1>} : memref<260x32xf32, #tpu.memory_space<vmem>>, vector<16x32xf32>
    %c1_68 = arith.constant 1 : index
    %c0_69 = arith.constant 0 : index
    %65 = tpu.strided_load %arg4[%c1_68, %c0_69] {strides = array<i32: 2, 1>} : memref<260x32xf32, #tpu.memory_space<vmem>>, vector<16x32xf32>
    %c2_70 = arith.constant 2 : index
    %c0_71 = arith.constant 0 : index
    %66 = tpu.strided_load %arg4[%c2_70, %c0_71] {strides = array<i32: 2, 1>} : memref<260x32xf32, #tpu.memory_space<vmem>>, vector<16x32xf32>
    %c3_72 = arith.constant 3 : index
    %c0_73 = arith.constant 0 : index
    %67 = tpu.strided_load %arg4[%c3_72, %c0_73] {strides = array<i32: 2, 1>} : memref<260x32xf32, #tpu.memory_space<vmem>>, vector<16x32xf32>
    %68 = tpu.concatenate %64, %65, %66, %67 in 1 : vector<16x32xf32>, vector<16x32xf32>, vector<16x32xf32>, vector<16x32xf32> -> vector<16x128xf32>
    %c130_74 = arith.constant 130 : index
    %c0_75 = arith.constant 0 : index
    %69 = tpu.strided_load %arg4[%c130_74, %c0_75] {strides = array<i32: 2, 1>} : memref<260x32xf32, #tpu.memory_space<vmem>>, vector<16x32xf32>
    %c131_76 = arith.constant 131 : index
    %c0_77 = arith.constant 0 : index
    %70 = tpu.strided_load %arg4[%c131_76, %c0_77] {strides = array<i32: 2, 1>} : memref<260x32xf32, #tpu.memory_space<vmem>>, vector<16x32xf32>
    %c132_78 = arith.constant 132 : index
    %c0_79 = arith.constant 0 : index
    %71 = tpu.strided_load %arg4[%c132_78, %c0_79] {strides = array<i32: 2, 1>} : memref<260x32xf32, #tpu.memory_space<vmem>>, vector<16x32xf32>
    %c133_80 = arith.constant 133 : index
    %c0_81 = arith.constant 0 : index
    %72 = tpu.strided_load %arg4[%c133_80, %c0_81] {strides = array<i32: 2, 1>} : memref<260x32xf32, #tpu.memory_space<vmem>>, vector<16x32xf32>
    %73 = tpu.concatenate %69, %70, %71, %72 in 1 : vector<16x32xf32>, vector<16x32xf32>, vector<16x32xf32>, vector<16x32xf32> -> vector<16x128xf32>
    %74 = tpu.concatenate %68, %73 in 0 : vector<16x128xf32>, vector<16x128xf32> -> vector<32x128xf32>
    %c2_82 = arith.constant 2 : index
    %c0_83 = arith.constant 0 : index
    %c0_84 = arith.constant 0 : index
    %75 = vector.load %arg1[%c2_82, %c0_83, %c0_84] : memref<6x128x32xf32, #tpu.memory_space<vmem>>, vector<1x128x32xf32>
    %76 = vector.shape_cast %75 : vector<1x128x32xf32> to vector<128x32xf32>
    %cst_85 = arith.constant dense<0.000000e+00> : vector<32x32xf32>
    %77 = tpu.matmul %74, %76, %cst_85 {dimension_numbers = #tpu.dot_dimension_numbers<[1], [0], [0], [1], [0, 0, 1, 1], [], []>} : vector<32x128xf32>, vector<128x32xf32>, vector<32x32xf32> -> vector<32x32xf32>
    %c2_86 = arith.constant 2 : index
    %c0_87 = arith.constant 0 : index
    %78 = vector.load %arg2[%c2_86, %c0_87] : memref<6x32xf32, #tpu.memory_space<vmem>>, vector<1x32xf32>
    %79 = vector.broadcast %78 : vector<1x32xf32> to vector<32x32xf32>
    %80 = arith.addf %77, %79 : vector<32x32xf32>
    %cst_88 = arith.constant 0.000000e+00 : f32
    %81 = vector.broadcast %cst_88 : f32 to vector<32x32xf32>
    %82 = arith.maximumf %80, %81 : vector<32x32xf32>
    %83 = vector.extract_strided_slice %82 {offsets = [0, 0], sizes = [16, 32], strides = [1, 1]} : vector<32x32xf32> to vector<16x32xf32>
    %c1_89 = arith.constant 1 : index
    %c0_90 = arith.constant 0 : index
    %84 = vector.load %arg4[%c1_89, %c0_90] : memref<260x32xf32, #tpu.memory_space<vmem>>, vector<16x32xf32>
    tpu.vector_store %arg4[%c1_89, %c0_90], %83 {strides = array<i32>} : memref<260x32xf32, #tpu.memory_space<vmem>>, vector<16x32xf32>,
    %cst_91 = arith.constant 0.000000e+00 : f32
    %85 = vector.broadcast %cst_91 : f32 to vector<1x32xf32>
    %c17 = arith.constant 17 : index
    %c0_92 = arith.constant 0 : index
    %86 = vector.load %arg4[%c17, %c0_92] : memref<260x32xf32, #tpu.memory_space<vmem>>, vector<1x32xf32>
    tpu.vector_store %arg4[%c17, %c0_92], %85 {strides = array<i32>} : memref<260x32xf32, #tpu.memory_space<vmem>>, vector<1x32xf32>,
    %87 = vector.extract_strided_slice %82 {offsets = [16, 0], sizes = [16, 32], strides = [1, 1]} : vector<32x32xf32> to vector<16x32xf32>
    %c131_93 = arith.constant 131 : index
    %c0_94 = arith.constant 0 : index
    %88 = vector.load %arg4[%c131_93, %c0_94] : memref<260x32xf32, #tpu.memory_space<vmem>>, vector<16x32xf32>
    tpu.vector_store %arg4[%c131_93, %c0_94], %87 {strides = array<i32>} : memref<260x32xf32, #tpu.memory_space<vmem>>, vector<16x32xf32>,
    %cst_95 = arith.constant 0.000000e+00 : f32
    %89 = vector.broadcast %cst_95 : f32 to vector<1x32xf32>
    %c147 = arith.constant 147 : index
    %c0_96 = arith.constant 0 : index
    %90 = vector.load %arg4[%c147, %c0_96] : memref<260x32xf32, #tpu.memory_space<vmem>>, vector<1x32xf32>
    tpu.vector_store %arg4[%c147, %c0_96], %89 {strides = array<i32>} : memref<260x32xf32, #tpu.memory_space<vmem>>, vector<1x32xf32>,
    %c0_97 = arith.constant 0 : index
    %c0_98 = arith.constant 0 : index
    %91 = tpu.strided_load %arg4[%c0_97, %c0_98] {strides = array<i32: 2, 1>} : memref<260x32xf32, #tpu.memory_space<vmem>>, vector<8x32xf32>
    %c1_99 = arith.constant 1 : index
    %c0_100 = arith.constant 0 : index
    %92 = tpu.strided_load %arg4[%c1_99, %c0_100] {strides = array<i32: 2, 1>} : memref<260x32xf32, #tpu.memory_space<vmem>>, vector<8x32xf32>
    %c2_101 = arith.constant 2 : index
    %c0_102 = arith.constant 0 : index
    %93 = tpu.strided_load %arg4[%c2_101, %c0_102] {strides = array<i32: 2, 1>} : memref<260x32xf32, #tpu.memory_space<vmem>>, vector<8x32xf32>
    %c3_103 = arith.constant 3 : index
    %c0_104 = arith.constant 0 : index
    %94 = tpu.strided_load %arg4[%c3_103, %c0_104] {strides = array<i32: 2, 1>} : memref<260x32xf32, #tpu.memory_space<vmem>>, vector<8x32xf32>
    %95 = tpu.concatenate %91, %92, %93, %94 in 1 : vector<8x32xf32>, vector<8x32xf32>, vector<8x32xf32>, vector<8x32xf32> -> vector<8x128xf32>
    %c130_105 = arith.constant 130 : index
    %c0_106 = arith.constant 0 : index
    %96 = tpu.strided_load %arg4[%c130_105, %c0_106] {strides = array<i32: 2, 1>} : memref<260x32xf32, #tpu.memory_space<vmem>>, vector<8x32xf32>
    %c131_107 = arith.constant 131 : index
    %c0_108 = arith.constant 0 : index
    %97 = tpu.strided_load %arg4[%c131_107, %c0_108] {strides = array<i32: 2, 1>} : memref<260x32xf32, #tpu.memory_space<vmem>>, vector<8x32xf32>
    %c132_109 = arith.constant 132 : index
    %c0_110 = arith.constant 0 : index
    %98 = tpu.strided_load %arg4[%c132_109, %c0_110] {strides = array<i32: 2, 1>} : memref<260x32xf32, #tpu.memory_space<vmem>>, vector<8x32xf32>
    %c133_111 = arith.constant 133 : index
    %c0_112 = arith.constant 0 : index
    %99 = tpu.strided_load %arg4[%c133_111, %c0_112] {strides = array<i32: 2, 1>} : memref<260x32xf32, #tpu.memory_space<vmem>>, vector<8x32xf32>
    %100 = tpu.concatenate %96, %97, %98, %99 in 1 : vector<8x32xf32>, vector<8x32xf32>, vector<8x32xf32>, vector<8x32xf32> -> vector<8x128xf32>
    %101 = tpu.concatenate %95, %100 in 0 : vector<8x128xf32>, vector<8x128xf32> -> vector<16x128xf32>
    %c3_113 = arith.constant 3 : index
    %c0_114 = arith.constant 0 : index
    %c0_115 = arith.constant 0 : index
    %102 = vector.load %arg1[%c3_113, %c0_114, %c0_115] : memref<6x128x32xf32, #tpu.memory_space<vmem>>, vector<1x128x32xf32>
    %103 = vector.shape_cast %102 : vector<1x128x32xf32> to vector<128x32xf32>
    %cst_116 = arith.constant dense<0.000000e+00> : vector<16x32xf32>
    %104 = tpu.matmul %101, %103, %cst_116 {dimension_numbers = #tpu.dot_dimension_numbers<[1], [0], [0], [1], [0, 0, 1, 1], [], []>} : vector<16x128xf32>, vector<128x32xf32>, vector<16x32xf32> -> vector<16x32xf32>
    %c3_117 = arith.constant 3 : index
    %c0_118 = arith.constant 0 : index
    %105 = vector.load %arg2[%c3_117, %c0_118] : memref<6x32xf32, #tpu.memory_space<vmem>>, vector<1x32xf32>
    %106 = vector.broadcast %105 : vector<1x32xf32> to vector<16x32xf32>
    %107 = arith.addf %104, %106 : vector<16x32xf32>
    %cst_119 = arith.constant 0.000000e+00 : f32
    %108 = vector.broadcast %cst_119 : f32 to vector<16x32xf32>
    %109 = arith.maximumf %107, %108 : vector<16x32xf32>
    %110 = vector.extract_strided_slice %109 {offsets = [0, 0], sizes = [8, 32], strides = [1, 1]} : vector<16x32xf32> to vector<8x32xf32>
    %c1_120 = arith.constant 1 : index
    %c0_121 = arith.constant 0 : index
    %111 = vector.load %arg4[%c1_120, %c0_121] : memref<260x32xf32, #tpu.memory_space<vmem>>, vector<8x32xf32>
    tpu.vector_store %arg4[%c1_120, %c0_121], %110 {strides = array<i32>} : memref<260x32xf32, #tpu.memory_space<vmem>>, vector<8x32xf32>,
    %cst_122 = arith.constant 0.000000e+00 : f32
    %112 = vector.broadcast %cst_122 : f32 to vector<1x32xf32>
    %c9 = arith.constant 9 : index
    %c0_123 = arith.constant 0 : index
    %113 = vector.load %arg4[%c9, %c0_123] : memref<260x32xf32, #tpu.memory_space<vmem>>, vector<1x32xf32>
    tpu.vector_store %arg4[%c9, %c0_123], %112 {strides = array<i32>} : memref<260x32xf32, #tpu.memory_space<vmem>>, vector<1x32xf32>,
    %114 = vector.extract_strided_slice %109 {offsets = [8, 0], sizes = [8, 32], strides = [1, 1]} : vector<16x32xf32> to vector<8x32xf32>
    %c131_124 = arith.constant 131 : index
    %c0_125 = arith.constant 0 : index
    %115 = vector.load %arg4[%c131_124, %c0_125] : memref<260x32xf32, #tpu.memory_space<vmem>>, vector<8x32xf32>
    tpu.vector_store %arg4[%c131_124, %c0_125], %114 {strides = array<i32>} : memref<260x32xf32, #tpu.memory_space<vmem>>, vector<8x32xf32>,
    %cst_126 = arith.constant 0.000000e+00 : f32
    %116 = vector.broadcast %cst_126 : f32 to vector<1x32xf32>
    %c139 = arith.constant 139 : index
    %c0_127 = arith.constant 0 : index
    %117 = vector.load %arg4[%c139, %c0_127] : memref<260x32xf32, #tpu.memory_space<vmem>>, vector<1x32xf32>
    tpu.vector_store %arg4[%c139, %c0_127], %116 {strides = array<i32>} : memref<260x32xf32, #tpu.memory_space<vmem>>, vector<1x32xf32>,
    %c0_128 = arith.constant 0 : index
    %c0_129 = arith.constant 0 : index
    %118 = tpu.strided_load %arg4[%c0_128, %c0_129] {strides = array<i32: 2, 1>} : memref<260x32xf32, #tpu.memory_space<vmem>>, vector<4x32xf32>
    %c1_130 = arith.constant 1 : index
    %c0_131 = arith.constant 0 : index
    %119 = tpu.strided_load %arg4[%c1_130, %c0_131] {strides = array<i32: 2, 1>} : memref<260x32xf32, #tpu.memory_space<vmem>>, vector<4x32xf32>
    %c2_132 = arith.constant 2 : index
    %c0_133 = arith.constant 0 : index
    %120 = tpu.strided_load %arg4[%c2_132, %c0_133] {strides = array<i32: 2, 1>} : memref<260x32xf32, #tpu.memory_space<vmem>>, vector<4x32xf32>
    %c3_134 = arith.constant 3 : index
    %c0_135 = arith.constant 0 : index
    %121 = tpu.strided_load %arg4[%c3_134, %c0_135] {strides = array<i32: 2, 1>} : memref<260x32xf32, #tpu.memory_space<vmem>>, vector<4x32xf32>
    %122 = tpu.concatenate %118, %119, %120, %121 in 1 : vector<4x32xf32>, vector<4x32xf32>, vector<4x32xf32>, vector<4x32xf32> -> vector<4x128xf32>
    %c130_136 = arith.constant 130 : index
    %c0_137 = arith.constant 0 : index
    %123 = tpu.strided_load %arg4[%c130_136, %c0_137] {strides = array<i32: 2, 1>} : memref<260x32xf32, #tpu.memory_space<vmem>>, vector<4x32xf32>
    %c131_138 = arith.constant 131 : index
    %c0_139 = arith.constant 0 : index
    %124 = tpu.strided_load %arg4[%c131_138, %c0_139] {strides = array<i32: 2, 1>} : memref<260x32xf32, #tpu.memory_space<vmem>>, vector<4x32xf32>
    %c132_140 = arith.constant 132 : index
    %c0_141 = arith.constant 0 : index
    %125 = tpu.strided_load %arg4[%c132_140, %c0_141] {strides = array<i32: 2, 1>} : memref<260x32xf32, #tpu.memory_space<vmem>>, vector<4x32xf32>
    %c133_142 = arith.constant 133 : index
    %c0_143 = arith.constant 0 : index
    %126 = tpu.strided_load %arg4[%c133_142, %c0_143] {strides = array<i32: 2, 1>} : memref<260x32xf32, #tpu.memory_space<vmem>>, vector<4x32xf32>
    %127 = tpu.concatenate %123, %124, %125, %126 in 1 : vector<4x32xf32>, vector<4x32xf32>, vector<4x32xf32>, vector<4x32xf32> -> vector<4x128xf32>
    %128 = tpu.concatenate %122, %127 in 0 : vector<4x128xf32>, vector<4x128xf32> -> vector<8x128xf32>
    %c4 = arith.constant 4 : index
    %c0_144 = arith.constant 0 : index
    %c0_145 = arith.constant 0 : index
    %129 = vector.load %arg1[%c4, %c0_144, %c0_145] : memref<6x128x32xf32, #tpu.memory_space<vmem>>, vector<1x128x32xf32>
    %130 = vector.shape_cast %129 : vector<1x128x32xf32> to vector<128x32xf32>
    %cst_146 = arith.constant dense<0.000000e+00> : vector<8x32xf32>
    %131 = tpu.matmul %128, %130, %cst_146 {dimension_numbers = #tpu.dot_dimension_numbers<[1], [0], [0], [1], [0, 0, 1, 1], [], []>} : vector<8x128xf32>, vector<128x32xf32>, vector<8x32xf32> -> vector<8x32xf32>
    %c4_147 = arith.constant 4 : index
    %c0_148 = arith.constant 0 : index
    %132 = vector.load %arg2[%c4_147, %c0_148] : memref<6x32xf32, #tpu.memory_space<vmem>>, vector<1x32xf32>
    %133 = vector.broadcast %132 : vector<1x32xf32> to vector<8x32xf32>
    %134 = arith.addf %131, %133 : vector<8x32xf32>
    %cst_149 = arith.constant 0.000000e+00 : f32
    %135 = vector.broadcast %cst_149 : f32 to vector<8x32xf32>
    %136 = arith.maximumf %134, %135 : vector<8x32xf32>
    %137 = vector.extract_strided_slice %136 {offsets = [0, 0], sizes = [4, 32], strides = [1, 1]} : vector<8x32xf32> to vector<4x32xf32>
    %c1_150 = arith.constant 1 : index
    %c0_151 = arith.constant 0 : index
    %138 = vector.load %arg4[%c1_150, %c0_151] : memref<260x32xf32, #tpu.memory_space<vmem>>, vector<4x32xf32>
    tpu.vector_store %arg4[%c1_150, %c0_151], %137 {strides = array<i32>} : memref<260x32xf32, #tpu.memory_space<vmem>>, vector<4x32xf32>,
    %cst_152 = arith.constant 0.000000e+00 : f32
    %139 = vector.broadcast %cst_152 : f32 to vector<1x32xf32>
    %c5 = arith.constant 5 : index
    %c0_153 = arith.constant 0 : index
    %140 = vector.load %arg4[%c5, %c0_153] : memref<260x32xf32, #tpu.memory_space<vmem>>, vector<1x32xf32>
    tpu.vector_store %arg4[%c5, %c0_153], %139 {strides = array<i32>} : memref<260x32xf32, #tpu.memory_space<vmem>>, vector<1x32xf32>,
    %141 = vector.extract_strided_slice %136 {offsets = [4, 0], sizes = [4, 32], strides = [1, 1]} : vector<8x32xf32> to vector<4x32xf32>
    %c131_154 = arith.constant 131 : index
    %c0_155 = arith.constant 0 : index
    %142 = vector.load %arg4[%c131_154, %c0_155] : memref<260x32xf32, #tpu.memory_space<vmem>>, vector<4x32xf32>
    tpu.vector_store %arg4[%c131_154, %c0_155], %141 {strides = array<i32>} : memref<260x32xf32, #tpu.memory_space<vmem>>, vector<4x32xf32>,
    %cst_156 = arith.constant 0.000000e+00 : f32
    %143 = vector.broadcast %cst_156 : f32 to vector<1x32xf32>
    %c135 = arith.constant 135 : index
    %c0_157 = arith.constant 0 : index
    %144 = vector.load %arg4[%c135, %c0_157] : memref<260x32xf32, #tpu.memory_space<vmem>>, vector<1x32xf32>
    tpu.vector_store %arg4[%c135, %c0_157], %143 {strides = array<i32>} : memref<260x32xf32, #tpu.memory_space<vmem>>, vector<1x32xf32>,
    %c0_158 = arith.constant 0 : index
    %c0_159 = arith.constant 0 : index
    %145 = tpu.strided_load %arg4[%c0_158, %c0_159] {strides = array<i32: 2, 1>} : memref<260x32xf32, #tpu.memory_space<vmem>>, vector<2x32xf32>
    %c1_160 = arith.constant 1 : index
    %c0_161 = arith.constant 0 : index
    %146 = tpu.strided_load %arg4[%c1_160, %c0_161] {strides = array<i32: 2, 1>} : memref<260x32xf32, #tpu.memory_space<vmem>>, vector<2x32xf32>
    %c2_162 = arith.constant 2 : index
    %c0_163 = arith.constant 0 : index
    %147 = tpu.strided_load %arg4[%c2_162, %c0_163] {strides = array<i32: 2, 1>} : memref<260x32xf32, #tpu.memory_space<vmem>>, vector<2x32xf32>
    %c3_164 = arith.constant 3 : index
    %c0_165 = arith.constant 0 : index
    %148 = tpu.strided_load %arg4[%c3_164, %c0_165] {strides = array<i32: 2, 1>} : memref<260x32xf32, #tpu.memory_space<vmem>>, vector<2x32xf32>
    %149 = tpu.concatenate %145, %146, %147, %148 in 1 : vector<2x32xf32>, vector<2x32xf32>, vector<2x32xf32>, vector<2x32xf32> -> vector<2x128xf32>
    %c130_166 = arith.constant 130 : index
    %c0_167 = arith.constant 0 : index
    %150 = tpu.strided_load %arg4[%c130_166, %c0_167] {strides = array<i32: 2, 1>} : memref<260x32xf32, #tpu.memory_space<vmem>>, vector<2x32xf32>
    %c131_168 = arith.constant 131 : index
    %c0_169 = arith.constant 0 : index
    %151 = tpu.strided_load %arg4[%c131_168, %c0_169] {strides = array<i32: 2, 1>} : memref<260x32xf32, #tpu.memory_space<vmem>>, vector<2x32xf32>
    %c132_170 = arith.constant 132 : index
    %c0_171 = arith.constant 0 : index
    %152 = tpu.strided_load %arg4[%c132_170, %c0_171] {strides = array<i32: 2, 1>} : memref<260x32xf32, #tpu.memory_space<vmem>>, vector<2x32xf32>
    %c133_172 = arith.constant 133 : index
    %c0_173 = arith.constant 0 : index
    %153 = tpu.strided_load %arg4[%c133_172, %c0_173] {strides = array<i32: 2, 1>} : memref<260x32xf32, #tpu.memory_space<vmem>>, vector<2x32xf32>
    %154 = tpu.concatenate %150, %151, %152, %153 in 1 : vector<2x32xf32>, vector<2x32xf32>, vector<2x32xf32>, vector<2x32xf32> -> vector<2x128xf32>
    %155 = tpu.concatenate %149, %154 in 0 : vector<2x128xf32>, vector<2x128xf32> -> vector<4x128xf32>
    %c5_174 = arith.constant 5 : index
    %c0_175 = arith.constant 0 : index
    %c0_176 = arith.constant 0 : index
    %156 = vector.load %arg1[%c5_174, %c0_175, %c0_176] : memref<6x128x32xf32, #tpu.memory_space<vmem>>, vector<1x128x32xf32>
    %157 = vector.shape_cast %156 : vector<1x128x32xf32> to vector<128x32xf32>
    %cst_177 = arith.constant dense<0.000000e+00> : vector<4x32xf32>
    %158 = tpu.matmul %155, %157, %cst_177 {dimension_numbers = #tpu.dot_dimension_numbers<[1], [0], [0], [1], [0, 0, 1, 1], [], []>} : vector<4x128xf32>, vector<128x32xf32>, vector<4x32xf32> -> vector<4x32xf32>
    %c5_178 = arith.constant 5 : index
    %c0_179 = arith.constant 0 : index
    %159 = vector.load %arg2[%c5_178, %c0_179] : memref<6x32xf32, #tpu.memory_space<vmem>>, vector<1x32xf32>
    %160 = vector.broadcast %159 : vector<1x32xf32> to vector<4x32xf32>
    %161 = arith.addf %158, %160 : vector<4x32xf32>
    %162 = vector.extract_strided_slice %161 {offsets = [0, 0], sizes = [2, 8], strides = [1, 1]} : vector<4x32xf32> to vector<2x8xf32>
    %163 = tpu.transpose %162, [1, 0] : vector<2x8xf32> -> vector<8x2xf32>
    %c0_180 = arith.constant 0 : index
    %c0_181 = arith.constant 0 : index
    %c0_182 = arith.constant 0 : index
    %164 = vector.load %arg3[%c0_180, %c0_181, %c0_182] : memref<2x8x2xf32, #tpu.memory_space<vmem>>, vector<1x8x2xf32>
    %165 = vector.shape_cast %164 : vector<1x8x2xf32> to vector<8x2xf32>
    %166 = vector.shape_cast %163 : vector<8x2xf32> to vector<1x8x2xf32>
    tpu.vector_store %arg3[%c0_180, %c0_181, %c0_182], %166 {strides = array<i32>} : memref<2x8x2xf32, #tpu.memory_space<vmem>>, vector<1x8x2xf32>,
    %167 = vector.extract_strided_slice %161 {offsets = [2, 0], sizes = [2, 8], strides = [1, 1]} : vector<4x32xf32> to vector<2x8xf32>
    %168 = tpu.transpose %167, [1, 0] : vector<2x8xf32> -> vector<8x2xf32>
    %c1_183 = arith.constant 1 : index
    %c0_184 = arith.constant 0 : index
    %c0_185 = arith.constant 0 : index
    %169 = vector.load %arg3[%c1_183, %c0_184, %c0_185] : memref<2x8x2xf32, #tpu.memory_space<vmem>>, vector<1x8x2xf32>
    %170 = vector.shape_cast %169 : vector<1x8x2xf32> to vector<8x2xf32>
    %171 = vector.shape_cast %168 : vector<8x2xf32> to vector<1x8x2xf32>
    tpu.vector_store %arg3[%c1_183, %c0_184, %c0_185], %171 {strides = array<i32>} : memref<2x8x2xf32, #tpu.memory_space<vmem>>, vector<1x8x2xf32>,
    return
  }
}

</mosaic_0001>

<bundles_post_ra>
// kernel: encoder_forward.1
= control target key start
LH: loop header
LB: loop body
LE: loop exit
PB: predicated region body
PF: predicated region fallthrough
CT: control target
= control target key end

     0   :  { %vm14_vm0 = vcmask 261120   ;;  %v2587_v1 = vmov 0.0   ;;  %vm82_vm1 = vcmask 31744   ;;  %vm47_vm2 = vcmask 257024   ;;  %s2589_s16 = smov 64   ;;  %s2590_s23 = smov 96   ;;  %s3308_s0 = inlined_call_operand.vmem [shape: f32[2,4,128], index: 0, kind: input, shape index: {}]   ;;  %s3309_s1 = inlined_call_operand.vmem [shape: f32[6,128,32], index: 1, kind: input, shape index: {}]   ;;  %s3310_s2 = inlined_call_operand.vmem [shape: f32[6,32], index: 2, kind: input, shape index: {}]   ;;  %s3311_s3 = inlined_call_operand.vmem [shape: f32[2,8,2], index: 3, kind: output, shape index: {}]  }
   0x1   :  { %v49_v0 = vld [vmem:[%s3308_s0] sm:$0xf]  ;;  %15 = vst.msk [vmem:[#allocation2] sm:$0xff] %vm14_vm0, %v2587_v1  ;;  %16 = vst.msk [vmem:[#allocation2 + $0x8] sm:$0xff] %vm14_vm0, %v2587_v1  ;;  %v1701_v2 = vld [vmem:[%s3308_s0 + $0x4] sm:$0xf] }
   0x2   :  { %17 = vst.msk [vmem:[#allocation2 + $0x10] sm:$0xff] %vm14_vm0, %v2587_v1  ;;  %18 = vst.msk [vmem:[#allocation2 + $0x18] sm:$0xff] %vm14_vm0, %v2587_v1  ;;  %50 = vxpose.xlu0.b32.start.end [1/1] (short) %v49_v0, 128  ;;  %s2588_s0 = smov 32   ;;  %v518_v20 = vld [vmem:[%s3309_s1] sm:$0xff]  ;;  %v519_v21 = vld [vmem:[%s3309_s1 + $0x8] sm:$0xff]  ;;  %vm708_vm3 = vcmask 253952  }
   0x3   :  { %19 = vst.msk [vmem:[#allocation2 + $0x20] sm:$0xff] %vm14_vm0, %v2587_v1  ;;  %20 = vst.msk [vmem:[#allocation2 + $0x28] sm:$0xff] %vm14_vm0, %v2587_v1  ;;  %v2160_v22 = vpack.c.bf16 %v519_v21, %v518_v20  ;;  %v520_v23 = vld [vmem:[%s3309_s1 + $0x10] sm:$0xff]  ;;  %v521_v24 = vld [vmem:[%s3309_s1 + $0x18] sm:$0xff]  ;;  %vm316_vm4 = vcmask 523264   ;;  %vm325_vm5 = vcmask 785408  }
   0x4   :  { %21 = vst.msk [vmem:[#allocation2 + $0x30] sm:$0xff] %vm14_vm0, %v2587_v1  ;;  %22 = vst.msk [vmem:[#allocation2 + $0x38] sm:$0xff] %vm14_vm0, %v2587_v1  ;;  %v2164_v25 = vpack.c.bf16 %v521_v24, %v520_v23  ;;  %v522_v26 = vld [vmem:[%s3309_s1 + $0x20] sm:$0xff]  ;;  %v523_v27 = vld [vmem:[%s3309_s1 + $0x28] sm:$0xff]  ;;  %vm2592_vm6 = vmmov 0   ;;  %vm1391_vm7 = vcmask 1043456  }
   0x5   :  { %23 = vst.msk [vmem:[#allocation2 + $0x40] sm:$0xff] %vm14_vm0, %v2587_v1  ;;  %24 = vst.msk [vmem:[#allocation2 + $0x48] sm:$0xff] %vm14_vm0, %v2587_v1  ;;  %2161 = vmatprep.subr.bf16.mxu0 %v2160_v22  ;;  %v2168_v31 = vpack.c.bf16 %v523_v27, %v522_v26  ;;  %v524_v32 = vld [vmem:[%s3309_s1 + $0x30] sm:$0xff]  ;;  %v525_v33 = vld [vmem:[%s3309_s1 + $0x38] sm:$0xff]  ;;  %vm1488_vm8 = vcmask 261124   ;;  %vm1532_vm9 = vcmask 1041408  }
   0x6   :  { %25 = vst.msk [vmem:[#allocation2 + $0x50] sm:$0xff] %vm14_vm0, %v2587_v1  ;;  %26 = vst.msk [vmem:[#allocation2 + $0x58] sm:$0xff] %vm14_vm0, %v2587_v1  ;;  %2163 = vmatpush3.bf16.msra.mxu0 %v2160_v22  ;;  %v2172_v35 = vpack.c.bf16 %v525_v33, %v524_v32  ;;  %v526_v36 = vld [vmem:[%s3309_s1 + $0x40] sm:$0xff]  ;;  %v527_v37 = vld [vmem:[%s3309_s1 + $0x48] sm:$0xff]  ;;  %vm1658_vm10 = vcmask 15360  }
   0x7   :  { %27 = vst.msk [vmem:[#allocation2 + $0x60] sm:$0xff] %vm14_vm0, %v2587_v1  ;;  %28 = vst.msk [vmem:[#allocation2 + $0x68] sm:$0xff] %vm14_vm0, %v2587_v1  ;;  %2165 = vmatprep.subr.bf16.mxu0 %v2164_v25  ;;  %v2176_v39 = vpack.c.bf16 %v527_v37, %v526_v36  ;;  %v528_v44 = vld [vmem:[%s3309_s1 + $0x50] sm:$0xff]  ;;  %v529_v45 = vld [vmem:[%s3309_s1 + $0x58] sm:$0xff] }
   0x8   :  { %29 = vst.msk [vmem:[#allocation2 + $0x70] sm:$0xff] %vm14_vm0, %v2587_v1  ;;  %30 = vst.msk [vmem:[#allocation2 + $0x78] sm:$0xff] %vm14_vm0, %v2587_v1  ;;  %v2180_v47 = vpack.c.bf16 %v529_v45, %v528_v44  ;;  %v530_v48 = vld [vmem:[%s3309_s1 + $0x60] sm:$0xff]  ;;  %v531_v49 = vld [vmem:[%s3309_s1 + $0x68] sm:$0xff] }
   0x9   :  { %31 = vst.msk [vmem:[#allocation2 + $0x80] sm:$0xff] %vm14_vm0, %v2587_v1  ;;  %32 = vst.msk [vmem:[#allocation2 + $0x88] sm:$0xff] %vm14_vm0, %v2587_v1  ;;  %v2184_v51 = vpack.c.bf16 %v531_v49, %v530_v48  ;;  %v532_v52 = vld [vmem:[%s3309_s1 + $0x70] sm:$0xff]  ;;  %v533_v53 = vld [vmem:[%s3309_s1 + $0x78] sm:$0xff] }
   0xa   :  { %33 = vst.msk [vmem:[#allocation2 + $0x90] sm:$0xff] %vm14_vm0, %v2587_v1  ;;  %34 = vst.msk [vmem:[#allocation2 + $0x98] sm:$0xff] %vm14_vm0, %v2587_v1  ;;  %2167 = vmatpush3.bf16.msra.mxu0 %v2164_v25  ;;  %v2188_v55 = vpack.c.bf16 %v533_v53, %v532_v52 }
   0xb   :  { %35 = vst.msk [vmem:[#allocation2 + $0xa0] sm:$0xff] %vm14_vm0, %v2587_v1  ;;  %36 = vst.msk [vmem:[#allocation2 + $0xa8] sm:$0xff] %vm14_vm0, %v2587_v1  ;;  %2169 = vmatprep.subr.bf16.mxu0 %v2168_v31 }
   0xc   :  { %37 = vst.msk [vmem:[#allocation2 + $0xb0] sm:$0xff] %vm14_vm0, %v2587_v1  ;;  %38 = vst.msk [vmem:[#allocation2 + $0xb8] sm:$0xff] %vm14_vm0, %v2587_v1 }
   0xd   :  { %39 = vst.msk [vmem:[#allocation2 + $0xc0] sm:$0xff] %vm14_vm0, %v2587_v1  ;;  %40 = vst.msk [vmem:[#allocation2 + $0xc8] sm:$0xff] %vm14_vm0, %v2587_v1 }
   0xe   :  { %41 = vst.msk [vmem:[#allocation2 + $0xd0] sm:$0xff] %vm14_vm0, %v2587_v1  ;;  %42 = vst.msk [vmem:[#allocation2 + $0xd8] sm:$0xff] %vm14_vm0, %v2587_v1  ;;  %2171 = vmatpush3.bf16.msra.mxu0 %v2168_v31 }
   0xf   :  { %43 = vst.msk [vmem:[#allocation2 + $0xe0] sm:$0xff] %vm14_vm0, %v2587_v1  ;;  %44 = vst.msk [vmem:[#allocation2 + $0xe8] sm:$0xff] %vm14_vm0, %v2587_v1  ;;  %2173 = vmatprep.subr.bf16.mxu0 %v2172_v35 }
  0x10   :  { %45 = vst.msk [vmem:[#allocation2 + $0xf0] sm:$0xff] %vm14_vm0, %v2587_v1  ;;  %46 = vst.msk [vmem:[#allocation2 + $0xf8] sm:$0xff] %vm14_vm0, %v2587_v1 }
  0x11   :  { %48 = vst.msk [vmem:[#allocation2 + $0x100] sm:$0xf] %vm47_vm2, %v2587_v1 }
  0x12   :  { %2175 = vmatpush3.bf16.msra.mxu0 %v2172_v35 }
  0x13   :  { %2177 = vmatprep.subr.bf16.mxu0 %v2176_v39 }
  0x16   :  { %2179 = vmatpush3.bf16.msra.mxu0 %v2176_v39 }
  0x17   :  { %2181 = vmatprep.subr.bf16.mxu0 %v2180_v47 }
  0x1a   :  { %2183 = vmatpush3.bf16.msra.mxu0 %v2180_v47 }
  0x1b   :  { %2185 = vmatprep.subr.bf16.mxu0 %v2184_v51 }
  0x1e   :  { %2187 = vmatpush3.bf16.msra.mxu0 %v2184_v51 }
  0x1f   :  { %2189 = vmatprep.subr.bf16.mxu0 %v2188_v55 }
  0x22   :  { %2191 = vmatpush3.bf16.msra.mxu0 %v2188_v55 }
  0x3f   :  { %101 = vxpose.xlu0.b32.start.end [1/1] (short) %v1701_v2, 128 }
  0x82   :  { %v66_v3 = vpop.trf.xlu0 }
  0x83   :  { %83 = vst.msk [vmem:[#allocation2 + $0x1] sm:$0xff] %vm82_vm1, %v66_v3 }
  0x86   :  { %v67_v4 = vpop.trf.xlu0 }
  0x87   :  { %84 = vst.msk [vmem:[#allocation2 + $0x9] sm:$0xff] %vm82_vm1, %v67_v4 }
  0x8a   :  { %v68_v5 = vpop.trf.xlu0 }
  0x8b   :  { %85 = vst.msk [vmem:[#allocation2 + $0x11] sm:$0xff] %vm82_vm1, %v68_v5 }
  0x8e   :  { %v69_v6 = vpop.trf.xlu0  ;;  %v165_v9 = vld [vmem:[#allocation2 + $0x1] ss:$2 sm:$0xff]  ;;  %v181_v14 = vld [vmem:[#allocation2 + $0x2] ss:$2 sm:$0xff] }
  0x8f   :  { %86 = vst.msk [vmem:[#allocation2 + $0x19] sm:$0xff] %vm82_vm1, %v69_v6 }
  0x92   :  { %v70_v7 = vpop.trf.xlu0  ;;  %v197_v3 = vld [vmem:[#allocation2 + $0x3] ss:$2 sm:$0xff] }
  0x93   :  { %87 = vst.msk [vmem:[#allocation2 + $0x21] sm:$0xff] %vm82_vm1, %v70_v7 }
  0x96   :  { %v71_v8 = vpop.trf.xlu0  ;;  %v167_v10 = vld [vmem:[#allocation2 + $0x11] ss:$2 sm:$0xff]  ;;  %v183_v12 = vld [vmem:[#allocation2 + $0x12] ss:$2 sm:$0xff] }
  0x97   :  { %88 = vst.msk [vmem:[#allocation2 + $0x29] sm:$0xff] %vm82_vm1, %v71_v8  ;;  %v2342_v11 = vpack.i.bf16 %v167_v10, %v165_v9  ;;  %v2347_v15 = vpack.i.bf16 %v183_v12, %v181_v14 }
  0x99   :  { %2343 = vrot.lane.b32.xlu1 %v2342_v11, %s2588_s0 }
  0x9a   :  { %v72_v13 = vpop.trf.xlu0  ;;  %v199_v0 = vld [vmem:[#allocation2 + $0x13] ss:$2 sm:$0xff] }
  0x9b   :  { %89 = vst.msk [vmem:[#allocation2 + $0x31] sm:$0xff] %vm82_vm1, %v72_v13  ;;  %v2362_v4 = vpack.i.bf16 %v199_v0, %v197_v3 }
  0x9d   :  { %2348 = vrot.lane.b32.xlu1 %v2347_v15, %s2589_s16 }
  0x9e   :  { %v73_v16 = vpop.trf.xlu0  ;;  %v169_v11 = vld [vmem:[#allocation2 + $0x21] ss:$2 sm:$0xff]  ;;  %v185_v15 = vld [vmem:[#allocation2 + $0x22] ss:$2 sm:$0xff] }
  0x9f   :  { %90 = vst.msk [vmem:[#allocation2 + $0x39] sm:$0xff] %vm82_vm1, %v73_v16 }
  0xa2   :  { %v74_v17 = vpop.trf.xlu0  ;;  %v201_v31 = vld [vmem:[#allocation2 + $0x23] ss:$2 sm:$0xff] }
  0xa3   :  { %91 = vst.msk [vmem:[#allocation2 + $0x41] sm:$0xff] %vm82_vm1, %v74_v17 }
  0xa6   :  { %v75_v18 = vpop.trf.xlu0  ;;  %v171_v9 = vld [vmem:[#allocation2 + $0x31] ss:$2 sm:$0xff]  ;;  %v187_v13 = vld [vmem:[#allocation2 + $0x32] ss:$2 sm:$0xff] }
  0xa7   :  { %92 = vst.msk [vmem:[#allocation2 + $0x49] sm:$0xff] %vm82_vm1, %v75_v18  ;;  %v2372_v12 = vpack.i.bf16 %v171_v9, %v169_v11  ;;  %v2377_v18 = vpack.i.bf16 %v187_v13, %v185_v15 }
  0xaa   :  { %v76_v19 = vpop.trf.xlu0  ;;  %v2716_v29 = vld [vmem:[#allocation2 + $0x33] ss:$2 sm:$0xff] }
  0xab   :  { %93 = vst.msk [vmem:[#allocation2 + $0x51] sm:$0xff] %vm82_vm1, %v76_v19  ;;  %v2392_v33 = vpack.i.bf16 %v2716_v29, %v201_v31 }
  0xae   :  { %v77_v28 = vpop.trf.xlu0  ;;  %v2718_v30 = vld [vmem:[#allocation2 + $0x41] ss:$2 sm:$0xff] }
  0xaf   :  { %94 = vst.msk [vmem:[#allocation2 + $0x59] sm:$0xff] %vm82_vm1, %v77_v28 }
  0xb0   :  { %709 = vst.msk [vmem:[#allocation2 + $0x41] sm:$0x1] %vm708_vm3, %v2587_v1 }
  0xb2   :  { %v78_v34 = vpop.trf.xlu0  ;;  %v205_v45 = vld [vmem:[#allocation2 + $0x43] ss:$2 sm:$0xff] }
  0xb3   :  { %95 = vst.msk [vmem:[#allocation2 + $0x61] sm:$0xff] %vm82_vm1, %v78_v34 }
  0xb6   :  { %v79_v38 = vpop.trf.xlu0  ;;  %v175_v34 = vld [vmem:[#allocation2 + $0x51] ss:$2 sm:$0xff]  ;;  %v191_v37 = vld [vmem:[#allocation2 + $0x52] ss:$2 sm:$0xff] }
  0xb7   :  { %96 = vst.msk [vmem:[#allocation2 + $0x69] sm:$0xff] %vm82_vm1, %v79_v38  ;;  %v2402_v36 = vpack.i.bf16 %v175_v34, %v2718_v30  ;;  %v189_v38 = vld [vmem:[#allocation2 + $0x42] ss:$2 sm:$0xff] }
  0xba   :  { %v80_v40 = vpop.trf.xlu0  ;;  %v207_v30 = vld [vmem:[#allocation2 + $0x53] ss:$2 sm:$0xff] }
  0xbb   :  { %97 = vst.msk [vmem:[#allocation2 + $0x71] sm:$0xff] %vm82_vm1, %v80_v40  ;;  %v2407_v40 = vpack.i.bf16 %v191_v37, %v189_v38 }
  0xbe   :  { %v81_v41 = vpop.trf.xlu0  ;;  %v177_v48 = vld [vmem:[#allocation2 + $0x61] ss:$2 sm:$0xff]  ;;  %v193_v51 = vld [vmem:[#allocation2 + $0x62] ss:$2 sm:$0xff] }
  0xbf   :  { %98 = vst.msk [vmem:[#allocation2 + $0x79] sm:$0xff] %vm82_vm1, %v81_v41 }
  0xc2   :  { %v117_v42 = vpop.trf.xlu0 }
  0xc3   :  { %133 = vst.msk [vmem:[#allocation2 + $0x83] sm:$0xff] %vm82_vm1, %v117_v42 }
  0xc6   :  { %v118_v43 = vpop.trf.xlu0  ;;  %v179_v47 = vld [vmem:[#allocation2 + $0x71] ss:$2 sm:$0xff] }
  0xc7   :  { %134 = vst.msk [vmem:[#allocation2 + $0x8b] sm:$0xff] %vm82_vm1, %v118_v43  ;;  %v2427_v49 = vpack.i.bf16 %v179_v47, %v177_v48  ;;  %v211_v53 = vld [vmem:[#allocation2 + $0x73] ss:$2 sm:$0xff] }
  0xca   :  { %v119_v46 = vpop.trf.xlu0 }
  0xcb   :  { %135 = vst.msk [vmem:[#allocation2 + $0x93] sm:$0xff] %vm82_vm1, %v119_v46  ;;  %v2422_v46 = vpack.i.bf16 %v207_v30, %v205_v45 }
  0xce   :  { %v120_v50 = vpop.trf.xlu0  ;;  %v351_v57 = vld [vmem:[#allocation2 + $0x83] ss:$2 sm:$0xff]  ;;  %v367_v62 = vld [vmem:[#allocation2 + $0x84] ss:$2 sm:$0xff] }
  0xcf   :  { %136 = vst.msk [vmem:[#allocation2 + $0x9b] sm:$0xff] %vm82_vm1, %v120_v50  ;;  %v195_v50 = vld [vmem:[#allocation2 + $0x72] ss:$2 sm:$0xff] }
  0xd0   :  { %v2432_v52 = vpack.i.bf16 %v195_v50, %v193_v51 }
  0xd2   :  { %v121_v54 = vpop.trf.xlu0  ;;  %v383_v7 = vld [vmem:[#allocation2 + $0x85] ss:$2 sm:$0xff] }
  0xd3   :  { %137 = vst.msk [vmem:[#allocation2 + $0xa3] sm:$0xff] %vm82_vm1, %v121_v54  ;;  %v209_v54 = vld [vmem:[#allocation2 + $0x63] ss:$2 sm:$0xff] }
  0xd4   :  { %v2437_v55 = vpack.i.bf16 %v211_v53, %v209_v54 }
  0xd6   :  { %v122_v56 = vpop.trf.xlu0  ;;  %v353_v58 = vld [vmem:[#allocation2 + $0x93] ss:$2 sm:$0xff]  ;;  %v369_v60 = vld [vmem:[#allocation2 + $0x94] ss:$2 sm:$0xff] }
  0xd7   :  { %138 = vst.msk [vmem:[#allocation2 + $0xab] sm:$0xff] %vm82_vm1, %v122_v56  ;;  %v2352_v59 = vpack.i.bf16 %v353_v58, %v351_v57  ;;  %v2357_v63 = vpack.i.bf16 %v369_v60, %v367_v62  ;;  %v337_v13 = vld [vmem:[#allocation2 + $0x92] ss:$2 sm:$0xff] }
  0xd9   :  { %2353 = vrot.lane.b32.xlu1 %v2352_v59, %s2588_s0 }
  0xda   :  { %v123_v61 = vpop.trf.xlu0  ;;  %v385_v5 = vld [vmem:[#allocation2 + $0x95] ss:$2 sm:$0xff] }
  0xdb   :  { %139 = vst.msk [vmem:[#allocation2 + $0xb3] sm:$0xff] %vm82_vm1, %v123_v61  ;;  %v2367_v8 = vpack.i.bf16 %v385_v5, %v383_v7 }
  0xdd   :  { %2358 = vrot.lane.b32.xlu1 %v2357_v63, %s2589_s16 }
  0xde   :  { %v124_v2 = vpop.trf.xlu0  ;;  %v355_v22 = vld [vmem:[#allocation2 + $0xa3] ss:$2 sm:$0xff]  ;;  %v371_v27 = vld [vmem:[#allocation2 + $0xa4] ss:$2 sm:$0xff] }
  0xdf   :  { %140 = vst.msk [vmem:[#allocation2 + $0xbb] sm:$0xff] %vm82_vm1, %v124_v2 }
  0xe1   :  { %2363 = vrot.lane.b32.xlu1 %v2362_v4, %s2590_s23 }
  0xe2   :  { %v125_v6 = vpop.trf.xlu0  ;;  %v387_v16 = vld [vmem:[#allocation2 + $0xa5] ss:$2 sm:$0xff] }
  0xe3   :  { %141 = vst.msk [vmem:[#allocation2 + $0xc3] sm:$0xff] %vm82_vm1, %v125_v6 }
  0xe5   :  { %2368 = vrot.lane.b32.xlu1 %v2367_v8, %s2590_s23 }
  0xe6   :  { %v126_v10 = vpop.trf.xlu0  ;;  %v357_v20 = vld [vmem:[#allocation2 + $0xb3] ss:$2 sm:$0xff]  ;;  %v373_v25 = vld [vmem:[#allocation2 + $0xb4] ss:$2 sm:$0xff] }
  0xe7   :  { %142 = vst.msk [vmem:[#allocation2 + $0xcb] sm:$0xff] %vm82_vm1, %v126_v10  ;;  %v2382_v24 = vpack.i.bf16 %v357_v20, %v355_v22  ;;  %v2387_v28 = vpack.i.bf16 %v373_v25, %v371_v27  ;;  %v151_v20 = vld [vmem:[#allocation2 + $0x10] ss:$2 sm:$0xff] }
  0xe9   :  { %2373 = vrot.lane.b32.xlu1 %v2372_v12, %s2588_s0 }
  0xea   :  { %v127_v14 = vpop.trf.xlu0  ;;  %v389_v17 = vld [vmem:[#allocation2 + $0xb5] ss:$2 sm:$0xff] }
  0xeb   :  { %143 = vst.msk [vmem:[#allocation2 + $0xd3] sm:$0xff] %vm82_vm1, %v127_v14  ;;  %v2397_v19 = vpack.i.bf16 %v389_v17, %v387_v16 }
  0xed   :  { %2378 = vrot.lane.b32.xlu1 %v2377_v18, %s2589_s16  ;;  %2398 = vrot.lane.b32.xlu0 %v2397_v19, %s2590_s23  ;;  %v149_v19 = vld [vmem:[#allocation2] ss:$2 sm:$0xff] }
  0xee   :  { %v128_v21 = vpop.trf.xlu0  ;;  %v359_v23 = vld [vmem:[#allocation2 + $0xc3] ss:$2 sm:$0xff]  ;;  %v375_v42 = vld [vmem:[#allocation2 + $0xc4] ss:$2 sm:$0xff] }
  0xef   :  { %144 = vst.msk [vmem:[#allocation2 + $0xdb] sm:$0xff] %vm82_vm1, %v128_v21 }
  0xf0   :  { %718 = vst.msk [vmem:[#allocation2 + $0xc3] sm:$0x1] %vm708_vm3, %v2587_v1 }
  0xf1   :  { %2383 = vrot.lane.b32.xlu1 %v2382_v24, %s2588_s0 }
  0xf2   :  { %v129_v26 = vpop.trf.xlu0  ;;  %v391_v57 = vld [vmem:[#allocation2 + $0xc5] ss:$2 sm:$0xff] }
  0xf3   :  { %145 = vst.msk [vmem:[#allocation2 + $0xe3] sm:$0xff] %vm82_vm1, %v129_v26 }
  0xf5   :  { %2388 = vrot.lane.b32.xlu1 %v2387_v28, %s2589_s16 }
  0xf6   :  { %v130_v32 = vpop.trf.xlu0  ;;  %v361_v41 = vld [vmem:[#allocation2 + $0xd3] ss:$2 sm:$0xff]  ;;  %v377_v43 = vld [vmem:[#allocation2 + $0xd4] ss:$2 sm:$0xff] }
  0xf7   :  { %146 = vst.msk [vmem:[#allocation2 + $0xeb] sm:$0xff] %vm82_vm1, %v130_v32  ;;  %v2412_v29 = vpack.i.bf16 %v361_v41, %v359_v23  ;;  %v2417_v44 = vpack.i.bf16 %v377_v43, %v375_v42  ;;  %v153_v41 = vld [vmem:[#allocation2 + $0x20] ss:$2 sm:$0xff] }
  0xf9   :  { %2393 = vrot.lane.b32.xlu1 %v2392_v33, %s2590_s23 }
  0xfa   :  { %v131_v35 = vpop.trf.xlu0  ;;  %v393_v56 = vld [vmem:[#allocation2 + $0xd5] ss:$2 sm:$0xff] }
  0xfb   :  { %147 = vst.msk [vmem:[#allocation2 + $0xf3] sm:$0xff] %vm82_vm1, %v131_v35  ;;  %v2442_v58 = vpack.i.bf16 %v393_v56, %v391_v57 }
  0xfd   :  { %2403 = vrot.lane.b32.xlu1 %v2402_v36, %s2588_s0 }
  0xfe   :  { %v132_v39 = vpop.trf.xlu0  ;;  %v363_v59 = vld [vmem:[#allocation2 + $0xe3] ss:$2 sm:$0xff]  ;;  %v379_v62 = vld [vmem:[#allocation2 + $0xe4] ss:$2 sm:$0xff] }
  0xff   :  { %148 = vst.msk [vmem:[#allocation2 + $0xfb] sm:$0xff] %vm82_vm1, %v132_v39 }
 0x101   :  { %2408 = vrot.lane.b32.xlu1 %v2407_v40, %s2589_s16 }
 0x102   :  { %v395_v2 = vld [vmem:[#allocation2 + $0xe5] ss:$2 sm:$0xff] }
 0x105   :  { %2413 = vrot.lane.b32.xlu1 %v2412_v29, %s2588_s0  ;;  %v155_v29 = vld [vmem:[#allocation2 + $0x30] ss:$2 sm:$0xff] }
 0x106   :  { %v365_v60 = vld [vmem:[#allocation2 + $0xf3] ss:$2 sm:$0xff]  ;;  %v381_v63 = vld [vmem:[#allocation2 + $0xf4] ss:$2 sm:$0xff] }
 0x107   :  { %v2447_v61 = vpack.i.bf16 %v365_v60, %v363_v59  ;;  %v2452_v0 = vpack.i.bf16 %v381_v63, %v379_v62  ;;  %v397_v3 = vld [vmem:[#allocation2 + $0xf5] ss:$2 sm:$0xff]  ;;  %v159_v59 = vld [vmem:[#allocation2 + $0x50] ss:$2 sm:$0xff] }
 0x108   :  { %v2457_v4 = vpack.i.bf16 %v397_v3, %v395_v2 }
 0x109   :  { %2418 = vrot.lane.b32.xlu1 %v2417_v44, %s2589_s16 }
 0x10b   :  { %v2344_v5 = vpop.permute.xlu1 %2343 }
 0x10c   :  { %v2346_v10 = vunpack.i.h.bf16 %v2344_v5  ;;  %v2345_v11 = vunpack.i.l.bf16 %v2344_v5 }
 0x10d   :  { %2423 = vrot.lane.b32.xlu1 %v2422_v46, %s2590_s23 }
 0x10e   :  { %v308_v23 = vsel %vm14_vm0, %v149_v19, %v2345_v11  ;;  %v309_v24 = vsel %vm14_vm0, %v151_v20, %v2346_v10  ;;  %v161_v19 = vld [vmem:[#allocation2 + $0x60] ss:$2 sm:$0xff]  ;;  %v163_v20 = vld [vmem:[#allocation2 + $0x70] ss:$2 sm:$0xff] }
 0x10f   :  { %v2349_v6 = vpop.permute.xlu1 %2348 }
 0x110   :  { %v2351_v14 = vunpack.i.h.bf16 %v2349_v6  ;;  %v2350_v15 = vunpack.i.l.bf16 %v2349_v6 }
 0x111   :  { %2428 = vrot.lane.b32.xlu1 %v2427_v49, %s2588_s0 }
 0x112   :  { %v317_v25 = vsel %vm316_vm4, %v308_v23, %v2350_v15  ;;  %v318_v26 = vsel %vm316_vm4, %v309_v24, %v2351_v14 }
 0x115   :  { %2433 = vrot.lane.b32.xlu1 %v2432_v52, %s2589_s16 }
 0x119   :  { %2438 = vrot.lane.b32.xlu1 %v2437_v55, %s2590_s23 }
 0x11d   :  { %2443 = vrot.lane.b32.xlu1 %v2442_v58, %s2590_s23  ;;  %v157_v58 = vld [vmem:[#allocation2 + $0x40] ss:$2 sm:$0xff] }
 0x121   :  { %2448 = vrot.lane.b32.xlu1 %v2447_v61, %s2588_s0 }
 0x125   :  { %2453 = vrot.lane.b32.xlu1 %v2452_v0, %s2589_s16 }
 0x129   :  { %2458 = vrot.lane.b32.xlu1 %v2457_v4, %s2590_s23 }
 0x14b   :  { %v2799_v7 = vpop.permute.xlu1 %2353 }
 0x14c   :  { %v2356_v8 = vunpack.i.h.bf16 %v2799_v7 }
 0x14e   :  { %v495_v16 = vsel %vm14_vm0, %v337_v13, %v2356_v8  ;;  %v2355_v13 = vunpack.i.l.bf16 %v2799_v7 }
 0x14f   :  { %v2802_v9 = vpop.permute.xlu1 %2358 }
 0x150   :  { %v2361_v12 = vunpack.i.h.bf16 %v2802_v9  ;;  %v2360_v14 = vunpack.i.l.bf16 %v2802_v9  ;;  %v335_v9 = vld [vmem:[#allocation2 + $0x82] ss:$2 sm:$0xff] }
 0x152   :  { %v2807_v17 = vsel %vm316_vm4, %v495_v16, %v2361_v12 }
 0x153   :  { %v2364_v18 = vpop.permute.xlu1 %2363 }
 0x154   :  { %v2366_v21 = vunpack.i.h.bf16 %v2364_v18  ;;  %v2365_v22 = vunpack.i.l.bf16 %v2364_v18 }
 0x156   :  { %v326_v27 = vsel %vm325_vm5, %v317_v25, %v2365_v22  ;;  %v327_v28 = vsel %vm325_vm5, %v318_v26, %v2366_v21 }
 0x157   :  { %1949 = vmatprep.mubr.f32.mxu0 %v326_v27  ;;  %v2815_v31 = vpop.permute.xlu1 %2368 }
 0x158   :  { %1950 = vmatmul.mubr.f32.vlgmr.msra.gmra.mrb[0].mxu0 %v327_v28  ;;  %v2370_v15 = vunpack.i.l.bf16 %v2815_v31 }
 0x15b   :  { %v2374_v32 = vpop.permute.xlu1 %2373 }
 0x15c   :  { %v2376_v36 = vunpack.i.h.bf16 %v2374_v32  ;;  %v2375_v37 = vunpack.i.l.bf16 %v2374_v32  ;;  %v494_v32 = vsel %vm14_vm0, %v335_v9, %v2355_v13 }
 0x15e   :  { %v310_v44 = vsel %vm14_vm0, %v153_v41, %v2375_v37  ;;  %v311_v30 = vsel %vm14_vm0, %v155_v29, %v2376_v36 }
 0x15f   :  { %v2379_v33 = vpop.permute.xlu1 %2378  ;;  %v2399_v36 = vpop.permute.xlu0 %2398 }
 0x160   :  { %v2381_v38 = vunpack.i.h.bf16 %v2379_v33  ;;  %v2380_v39 = vunpack.i.l.bf16 %v2379_v33  ;;  %v2371_v33 = vunpack.i.h.bf16 %v2815_v31 }
 0x162   :  { %v319_v45 = vsel %vm316_vm4, %v310_v44, %v2380_v39  ;;  %v320_v46 = vsel %vm316_vm4, %v311_v30, %v2381_v38  ;;  %v502_v39 = vsel %vm316_vm4, %v494_v32, %v2360_v14  ;;  %v2400_v44 = vunpack.i.l.bf16 %v2399_v36  ;;  %v341_v30 = vld [vmem:[#allocation2 + $0xb2] ss:$2 sm:$0xff] }
 0x163   :  { %v2817_v34 = vpop.permute.xlu1 %2383  ;;  %v510_v29 = vsel %vm325_vm5, %v502_v39, %v2370_v15 }
 0x164   :  { %v2385_v16 = vunpack.i.l.bf16 %v2817_v34  ;;  %v2386_v37 = vunpack.i.h.bf16 %v2817_v34 }
 0x167   :  { %v2819_v35 = vpop.permute.xlu1 %2388 }
 0x168   :  { %v2390_v25 = vunpack.i.l.bf16 %v2819_v35  ;;  %v2391_v41 = vunpack.i.h.bf16 %v2819_v35  ;;  %v497_v35 = vsel %vm14_vm0, %v341_v30, %v2386_v37  ;;  %v1707_v37 = vld [vmem:[%s3309_s1 + $0xa0] sm:$0xff]  ;;  %v1712_v30 = vld [vmem:[%s3309_s1 + $0xc8] sm:$0xff] }
 0x16b   :  { %v2394_v40 = vpop.permute.xlu1 %2393 }
 0x16c   :  { %v2396_v42 = vunpack.i.h.bf16 %v2394_v40  ;;  %v2395_v43 = vunpack.i.l.bf16 %v2394_v40  ;;  %v339_v40 = vld [vmem:[#allocation2 + $0xa2] ss:$2 sm:$0xff] }
 0x16e   :  { %v328_v47 = vsel %vm325_vm5, %v319_v45, %v2395_v43  ;;  %v329_v48 = vsel %vm325_vm5, %v320_v46, %v2396_v42  ;;  %v496_v42 = vsel %vm14_vm0, %v339_v40, %v2385_v16  ;;  %v511_v46 = vsel %vm325_vm5, %v2807_v17, %v2371_v33 }
 0x16f   :  { %v2404_v49 = vpop.permute.xlu1 %2403  ;;  %1952 = vmatprep.mubr.f32.mxu0 %v328_v47  ;;  %v504_v43 = vsel %vm316_vm4, %v496_v42, %v2390_v25  ;;  %v1709_v42 = vld [vmem:[%s3309_s1 + $0xb0] sm:$0xff] }
 0x170   :  { %1953 = vmatmul.mubr.f32.gmra.mrb[2].mxu0 %v329_v48  ;;  %v2406_v53 = vunpack.i.h.bf16 %v2404_v49  ;;  %v2405_v54 = vunpack.i.l.bf16 %v2404_v49  ;;  %v512_v48 = vsel %vm325_vm5, %v504_v43, %v2400_v44  ;;  %v505_v49 = vsel %vm316_vm4, %v497_v35, %v2391_v41  ;;  %v1710_v43 = vld [vmem:[%s3309_s1 + $0xb8] sm:$0xff] }
 0x171   :  { %v2204_v44 = vpack.c.bf16 %v1710_v43, %v1709_v42 }
 0x172   :  { %v312_v62 = vsel %vm14_vm0, %v157_v58, %v2405_v54  ;;  %v313_v63 = vsel %vm14_vm0, %v159_v59, %v2406_v53  ;;  %v343_v54 = vld [vmem:[#allocation2 + $0xc2] ss:$2 sm:$0xff] }
 0x173   :  { %v2409_v50 = vpop.permute.xlu1 %2408 }
 0x174   :  { %v2411_v55 = vunpack.i.h.bf16 %v2409_v50  ;;  %v2410_v56 = vunpack.i.l.bf16 %v2409_v50  ;;  %v2401_v50 = vunpack.i.h.bf16 %v2399_v36 }
 0x176   :  { %v321_v0 = vsel %vm316_vm4, %v312_v62, %v2410_v56  ;;  %v322_v2 = vsel %vm316_vm4, %v313_v63, %v2411_v55  ;;  %v513_v17 = vsel %vm325_vm5, %v505_v49, %v2401_v50  ;;  %v345_v63 = vld [vmem:[#allocation2 + $0xd2] ss:$2 sm:$0xff] }
 0x177   :  { %v2827_v51 = vpop.permute.xlu1 %2413 }
 0x178   :  { %v2415_v31 = vunpack.i.l.bf16 %v2827_v51  ;;  %v2416_v53 = vunpack.i.h.bf16 %v2827_v51 }
 0x17a   :  { %v498_v56 = vsel %vm14_vm0, %v343_v54, %v2415_v31  ;;  %v1711_v31 = vld [vmem:[%s3309_s1 + $0xc0] sm:$0xff] }
 0x17b   :  { %v2829_v52 = vpop.permute.xlu1 %2418 }
 0x17c   :  { %v2420_v34 = vunpack.i.l.bf16 %v2829_v52  ;;  %v2421_v55 = vunpack.i.h.bf16 %v2829_v52 }
 0x17e   :  { %v506_v59 = vsel %vm316_vm4, %v498_v56, %v2420_v34  ;;  %v1713_v34 = vld [vmem:[%s3309_s1 + $0xd0] sm:$0xff] }
 0x17f   :  { %v2424_v57 = vpop.permute.xlu1 %2423 }
 0x180   :  { %v2426_v60 = vunpack.i.h.bf16 %v2424_v57  ;;  %v2425_v61 = vunpack.i.l.bf16 %v2424_v57 }
 0x182   :  { %v330_v3 = vsel %vm325_vm5, %v321_v0, %v2425_v61  ;;  %v331_v4 = vsel %vm325_vm5, %v322_v2, %v2426_v60  ;;  %v499_v2 = vsel %vm14_vm0, %v345_v63, %v2416_v53 }
 0x183   :  { %v2429_v5 = vpop.permute.xlu1 %2428  ;;  %1955 = vmatprep.mubr.f32.mxu0 %v330_v3  ;;  %v507_v52 = vsel %vm316_vm4, %v499_v2, %v2421_v55 }
 0x184   :  { %1956 = vmatmul.mubr.f32.gmra.mrb[4].mxu0 %v331_v4  ;;  %v2431_v8 = vunpack.i.h.bf16 %v2429_v5  ;;  %v2430_v10 = vunpack.i.l.bf16 %v2429_v5  ;;  %v347_v5 = vld [vmem:[#allocation2 + $0xe2] ss:$2 sm:$0xff] }
 0x186   :  { %v314_v23 = vsel %vm14_vm0, %v161_v19, %v2430_v10  ;;  %v315_v24 = vsel %vm14_vm0, %v163_v20, %v2431_v8  ;;  %v1704_v19 = vld [vmem:[%s3309_s1 + $0x88] sm:$0xff]  ;;  %v1705_v20 = vld [vmem:[%s3309_s1 + $0x90] sm:$0xff] }
 0x187   :  { %v2434_v6 = vpop.permute.xlu1 %2433 }
 0x188   :  { %v2436_v11 = vunpack.i.h.bf16 %v2434_v6  ;;  %v2435_v12 = vunpack.i.l.bf16 %v2434_v6  ;;  %v349_v6 = vld [vmem:[#allocation2 + $0xf2] ss:$2 sm:$0xff] }
 0x18a   :  { %v323_v26 = vsel %vm316_vm4, %v314_v23, %v2435_v12  ;;  %v324_v7 = vsel %vm316_vm4, %v315_v24, %v2436_v11  ;;  %v2893_v24 = vld [vmem:[%s3310_s2] ss:$0 sm:$0xff] }
 0x18b   :  { %v2439_v18 = vpop.permute.xlu1 %2438 }
 0x18c   :  { %v2441_v21 = vunpack.i.h.bf16 %v2439_v18  ;;  %v2440_v22 = vunpack.i.l.bf16 %v2439_v18  ;;  %v1703_v18 = vld [vmem:[%s3309_s1 + $0x80] sm:$0xff] }
 0x18e   :  { %v332_v27 = vsel %vm325_vm5, %v323_v26, %v2440_v22  ;;  %v333_v28 = vsel %vm325_vm5, %v324_v7, %v2441_v21  ;;  %v2192_v21 = vpack.c.bf16 %v1704_v19, %v1703_v18  ;;  %v1706_v22 = vld [vmem:[%s3309_s1 + $0x98] sm:$0xff] }
 0x18f   :  { %1958 = vmatprep.mubr.f32.mxu0 %v332_v27  ;;  %v2444_v38 = vpop.permute.xlu1 %2443  ;;  %v2196_v23 = vpack.c.bf16 %v1706_v22, %v1705_v20 }
 0x190   :  { %1959 = vmatmul.mubr.f32.gmra.mrb[6].mxu0 %v333_v28  ;;  %v2445_v47 = vunpack.i.l.bf16 %v2444_v38  ;;  %v2446_v57 = vunpack.i.h.bf16 %v2444_v38  ;;  %2193 = vmatprep.subr.bf16.mxu1 %v2192_v21  ;;  %v1708_v38 = vld [vmem:[%s3309_s1 + $0xa8] sm:$0xff] }
 0x191   :  { %1961 = vmatprep.mubr.f32.mxu0 %v510_v29  ;;  %2195 = vmatpush3.bf16.msra.mxu1 %v2192_v21  ;;  %v2200_v40 = vpack.c.bf16 %v1708_v38, %v1707_v37 }
 0x192   :  { %v514_v62 = vsel %vm325_vm5, %v506_v59, %v2445_v47  ;;  %v515_v4 = vsel %vm325_vm5, %v507_v52, %v2446_v57  ;;  %2197 = vmatprep.subr.bf16.mxu1 %v2196_v23  ;;  %v1715_v47 = vld [vmem:[%s3309_s1 + $0xe0] sm:$0xff] }
 0x193   :  { %v2449_v45 = vpop.permute.xlu1 %2448 }
 0x194   :  { %1962 = vmatmul.mubr.f32.gmra.mrb[8].mxu0 %v511_v46  ;;  %v2451_v60 = vunpack.i.h.bf16 %v2449_v45  ;;  %v2450_v61 = vunpack.i.l.bf16 %v2449_v45  ;;  %v2208_v45 = vpack.c.bf16 %v1712_v30, %v1711_v31  ;;  %v1714_v46 = vld [vmem:[%s3309_s1 + $0xd8] sm:$0xff] }
 0x195   :  { %1964 = vmatprep.mubr.f32.mxu0 %v512_v48  ;;  %2199 = vmatpush3.bf16.msra.mxu1 %v2196_v23  ;;  %v2212_v35 = vpack.c.bf16 %v1714_v46, %v1713_v34  ;;  %v1716_v48 = vld [vmem:[%s3309_s1 + $0xe8] sm:$0xff] }
 0x196   :  { %v500_v11 = vsel %vm14_vm0, %v347_v5, %v2450_v61  ;;  %v501_v12 = vsel %vm14_vm0, %v349_v6, %v2451_v60  ;;  %2201 = vmatprep.subr.bf16.mxu1 %v2200_v40  ;;  %v2216_v54 = vpack.c.bf16 %v1716_v48, %v1715_v47  ;;  %v1717_v60 = vld [vmem:[%s3309_s1 + $0xf0] sm:$0xff]  ;;  %v1718_v61 = vld [vmem:[%s3309_s1 + $0xf8] sm:$0xff] }
 0x197   :  { %v2454_v58 = vpop.permute.xlu1 %2453  ;;  %v2220_v63 = vpack.c.bf16 %v1718_v61, %v1717_v60 }
 0x198   :  { %1965 = vmatmul.mubr.f32.gmra.mrb[10].mxu0 %v513_v17  ;;  %v2456_v0 = vunpack.i.h.bf16 %v2454_v58  ;;  %v2455_v51 = vunpack.i.l.bf16 %v2454_v58 }
 0x199   :  { %1967 = vmatprep.mubr.f32.mxu0 %v514_v62  ;;  %2203 = vmatpush3.bf16.msra.mxu1 %v2200_v40 }
 0x19a   :  { %v508_v13 = vsel %vm316_vm4, %v500_v11, %v2455_v51  ;;  %v509_v14 = vsel %vm316_vm4, %v501_v12, %v2456_v0  ;;  %2205 = vmatprep.subr.bf16.mxu1 %v2204_v44 }
 0x19b   :  { %v2459_v3 = vpop.permute.xlu1 %2458 }
 0x19c   :  { %v2461_v8 = vunpack.i.h.bf16 %v2459_v3  ;;  %v2460_v10 = vunpack.i.l.bf16 %v2459_v3  ;;  %1968 = vmatmul.mubr.f32.gmra.mrb[12].mxu0 %v515_v4 }
 0x19d   :  { %2207 = vmatpush3.bf16.msra.mxu1 %v2204_v44 }
 0x19e   :  { %v516_v15 = vsel %vm325_vm5, %v508_v13, %v2460_v10  ;;  %v517_v16 = vsel %vm325_vm5, %v509_v14, %v2461_v8  ;;  %2209 = vmatprep.subr.bf16.mxu1 %v2208_v45 }
 0x19f   :  { %1970 = vmatprep.mubr.f32.mxu0 %v516_v15 }
 0x1a0   :  { %1971 = vmatmul.mubr.f32.gmra.mrb[14].mxu0 %v517_v16 }
 0x1a1   :  { %2211 = vmatpush3.bf16.msra.mxu1 %v2208_v45 }
 0x1a2   :  { %2213 = vmatprep.subr.bf16.mxu1 %v2212_v35 }
 0x1a5   :  { %2215 = vmatpush3.bf16.msra.mxu1 %v2212_v35 }
 0x1a6   :  { %2217 = vmatprep.subr.bf16.mxu1 %v2216_v54 }
 0x1a9   :  { %2219 = vmatpush3.bf16.msra.mxu1 %v2216_v54 }
 0x1aa   :  { %2221 = vmatprep.subr.bf16.mxu1 %v2220_v63 }
 0x1ad   :  { %2223 = vmatpush3.bf16.msra.mxu1 %v2220_v63 }
 0x22b   :  { %v1951_v25 = vpop.f32.mrb[0].mxu0 }
 0x22c   :  { %v611_v26 = vadd.f32 %v1951_v25, %v2893_v24  ;;  %v605_v7 = vpop.f32.mrb[1].mxu0 }
 0x22d   :  { %v606_v9 = vadd.f32 %v2893_v24, %v605_v7 }
 0x22e   :  { %v685_v27 = vmax.f32 %v611_v26, 0.0 }
 0x22f   :  { %v684_v28 = vmax.f32 %v606_v9, 0.0 }
 0x230   :  { %701 = vst.msk [vmem:[#allocation2 + $0x9] sm:$0xff] %vm14_vm0, %v685_v27 }
 0x231   :  { %700 = vst.msk [vmem:[#allocation2 + $0x1] sm:$0xff] %vm14_vm0, %v684_v28 }
 0x238   :  { %v723_v49 = vld [vmem:[#allocation2 + $0x1] ss:$2 sm:$0xff]  ;;  %v727_v56 = vld [vmem:[#allocation2 + $0x2] ss:$2 sm:$0xff] }
 0x243   :  { %v1954_v32 = vpop.f32.mrb[2].mxu0 }
 0x244   :  { %v621_v33 = vadd.f32 %v1954_v32, %v2893_v24  ;;  %v615_v36 = vpop.f32.mrb[3].mxu0 }
 0x245   :  { %v616_v39 = vadd.f32 %v2893_v24, %v615_v36 }
 0x246   :  { %v687_v41 = vmax.f32 %v621_v33, 0.0 }
 0x247   :  { %v686_v29 = vmax.f32 %v616_v39, 0.0 }
 0x248   :  { %703 = vst.msk [vmem:[#allocation2 + $0x19] sm:$0xff] %vm14_vm0, %v687_v41 }
 0x249   :  { %702 = vst.msk [vmem:[#allocation2 + $0x11] sm:$0xff] %vm14_vm0, %v686_v29 }
 0x250   :  { %v724_v50 = vld [vmem:[#allocation2 + $0x11] ss:$2 sm:$0xff]  ;;  %v728_v55 = vld [vmem:[#allocation2 + $0x12] ss:$2 sm:$0xff] }
 0x251   :  { %v2462_v53 = vpack.i.bf16 %v724_v50, %v723_v49  ;;  %v2467_v57 = vpack.i.bf16 %v728_v55, %v727_v56  ;;  %v731_v52 = vld [vmem:[#allocation2 + $0x3] ss:$2 sm:$0xff] }
 0x253   :  { %2463 = vrot.lane.b32.xlu1 %v2462_v53, %s2588_s0 }
 0x257   :  { %v1957_v58 = vpop.f32.mrb[4].mxu0  ;;  %2468 = vrot.lane.b32.xlu1 %v2467_v57, %s2589_s16 }
 0x258   :  { %v631_v17 = vadd.f32 %v1957_v58, %v2893_v24  ;;  %v625_v59 = vpop.f32.mrb[5].mxu0 }
 0x259   :  { %v626_v62 = vadd.f32 %v2893_v24, %v625_v59 }
 0x25a   :  { %v689_v0 = vmax.f32 %v631_v17, 0.0 }
 0x25b   :  { %v688_v51 = vmax.f32 %v626_v62, 0.0 }
 0x25c   :  { %705 = vst.msk [vmem:[#allocation2 + $0x29] sm:$0xff] %vm14_vm0, %v689_v0 }
 0x25d   :  { %704 = vst.msk [vmem:[#allocation2 + $0x21] sm:$0xff] %vm14_vm0, %v688_v51 }
 0x263   :  { %v1960_v2 = vpop.f32.mrb[6].mxu0 }
 0x264   :  { %v641_v3 = vadd.f32 %v1960_v2, %v2893_v24  ;;  %v635_v4 = vpop.f32.mrb[7].mxu0  ;;  %v732_v5 = vld [vmem:[#allocation2 + $0x13] ss:$2 sm:$0xff]  ;;  %v729_v29 = vld [vmem:[#allocation2 + $0x22] ss:$2 sm:$0xff] }
 0x265   :  { %v725_v6 = vld [vmem:[#allocation2 + $0x21] ss:$2 sm:$0xff]  ;;  %v636_v8 = vadd.f32 %v2893_v24, %v635_v4  ;;  %v2472_v10 = vpack.i.bf16 %v732_v5, %v731_v52  ;;  %v719_v5 = vld [vmem:[#allocation2] ss:$2 sm:$0xff] }
 0x266   :  { %1010 = vst.msk [vmem:[#allocation2 + $0x21] sm:$0x1] %vm708_vm3, %v2587_v1  ;;  %v691_v11 = vmax.f32 %v641_v3, 0.0 }
 0x267   :  { %v690_v12 = vmax.f32 %v636_v8, 0.0  ;;  %v1963_v13 = vpop.f32.mrb[8].mxu0  ;;  %2473 = vrot.lane.b32.xlu1 %v2472_v10, %s2590_s23 }
 0x268   :  { %707 = vst.msk [vmem:[#allocation2 + $0x39] sm:$0xff] %vm14_vm0, %v691_v11  ;;  %v651_v14 = vadd.f32 %v1963_v13, %v2893_v24  ;;  %v645_v15 = vpop.f32.mrb[9].mxu0 }
 0x269   :  { %706 = vst.msk [vmem:[#allocation2 + $0x31] sm:$0xff] %vm14_vm0, %v690_v12  ;;  %v646_v16 = vadd.f32 %v2893_v24, %v645_v15 }
 0x26a   :  { %v693_v18 = vmax.f32 %v651_v14, 0.0 }
 0x26b   :  { %v692_v19 = vmax.f32 %v646_v16, 0.0  ;;  %v1966_v20 = vpop.f32.mrb[10].mxu0 }
 0x26c   :  { %711 = vst.msk [vmem:[#allocation2 + $0x8b] sm:$0xff] %vm14_vm0, %v693_v18  ;;  %v661_v21 = vadd.f32 %v1966_v20, %v2893_v24  ;;  %v655_v22 = vpop.f32.mrb[11].mxu0 }
 0x26d   :  { %710 = vst.msk [vmem:[#allocation2 + $0x83] sm:$0xff] %vm14_vm0, %v692_v19  ;;  %v656_v23 = vadd.f32 %v2893_v24, %v655_v22 }
 0x26e   :  { %v695_v25 = vmax.f32 %v661_v21, 0.0 }
 0x26f   :  { %v694_v26 = vmax.f32 %v656_v23, 0.0  ;;  %v1969_v7 = vpop.f32.mrb[12].mxu0 }
 0x270   :  { %713 = vst.msk [vmem:[#allocation2 + $0x9b] sm:$0xff] %vm14_vm0, %v695_v25  ;;  %v671_v9 = vadd.f32 %v1969_v7, %v2893_v24  ;;  %v665_v27 = vpop.f32.mrb[13].mxu0  ;;  %v726_v28 = vld [vmem:[#allocation2 + $0x31] ss:$2 sm:$0xff]  ;;  %v730_v37 = vld [vmem:[#allocation2 + $0x32] ss:$2 sm:$0xff] }
 0x271   :  { %712 = vst.msk [vmem:[#allocation2 + $0x93] sm:$0xff] %vm14_vm0, %v694_v26  ;;  %v666_v32 = vadd.f32 %v2893_v24, %v665_v27  ;;  %v2477_v33 = vpack.i.bf16 %v726_v28, %v725_v6  ;;  %v2482_v43 = vpack.i.bf16 %v730_v37, %v729_v29  ;;  %v733_v31 = vld [vmem:[#allocation2 + $0x23] ss:$2 sm:$0xff]  ;;  %v734_v30 = vld [vmem:[#allocation2 + $0x33] ss:$2 sm:$0xff] }
 0x272   :  { %v697_v36 = vmax.f32 %v671_v9, 0.0  ;;  %v2487_v45 = vpack.i.bf16 %v734_v30, %v733_v31  ;;  %v720_v6 = vld [vmem:[#allocation2 + $0x10] ss:$2 sm:$0xff]  ;;  %v721_v26 = vld [vmem:[#allocation2 + $0x20] ss:$2 sm:$0xff] }
 0x273   :  { %v696_v38 = vmax.f32 %v666_v32, 0.0  ;;  %2478 = vrot.lane.b32.xlu1 %v2477_v33, %s2588_s0  ;;  %v1972_v39 = vpop.f32.mrb[14].mxu0  ;;  %v722_v7 = vld [vmem:[#allocation2 + $0x30] ss:$2 sm:$0xff] }
 0x274   :  { %715 = vst.msk [vmem:[#allocation2 + $0xab] sm:$0xff] %vm14_vm0, %v697_v36  ;;  %v681_v40 = vadd.f32 %v1972_v39, %v2893_v24  ;;  %v675_v41 = vpop.f32.mrb[15].mxu0  ;;  %v799_v35 = vld [vmem:[#allocation2 + $0x83] ss:$2 sm:$0xff]  ;;  %v803_v50 = vld [vmem:[#allocation2 + $0x84] ss:$2 sm:$0xff] }
 0x275   :  { %714 = vst.msk [vmem:[#allocation2 + $0xa3] sm:$0xff] %vm14_vm0, %v696_v38  ;;  %v676_v42 = vadd.f32 %v2893_v24, %v675_v41  ;;  %v795_v31 = vld [vmem:[#allocation2 + $0x82] ss:$2 sm:$0xff] }
 0x276   :  { %v699_v44 = vmax.f32 %v681_v40, 0.0 }
 0x277   :  { %v698_v34 = vmax.f32 %v676_v42, 0.0  ;;  %2483 = vrot.lane.b32.xlu1 %v2482_v43, %s2589_s16 }
 0x278   :  { %717 = vst.msk [vmem:[#allocation2 + $0xbb] sm:$0xff] %vm14_vm0, %v699_v44  ;;  %v800_v46 = vld [vmem:[#allocation2 + $0x93] ss:$2 sm:$0xff]  ;;  %v804_v24 = vld [vmem:[#allocation2 + $0x94] ss:$2 sm:$0xff] }
 0x279   :  { %716 = vst.msk [vmem:[#allocation2 + $0xb3] sm:$0xff] %vm14_vm0, %v698_v34  ;;  %v2492_v49 = vpack.i.bf16 %v800_v46, %v799_v35  ;;  %v2497_v53 = vpack.i.bf16 %v804_v24, %v803_v50  ;;  %v807_v54 = vld [vmem:[#allocation2 + $0x85] ss:$2 sm:$0xff]  ;;  %v796_v30 = vld [vmem:[#allocation2 + $0x92] ss:$2 sm:$0xff] }
 0x27b   :  { %2488 = vrot.lane.b32.xlu1 %v2487_v45, %s2590_s23 }
 0x27c   :  { %v808_v47 = vld [vmem:[#allocation2 + $0x95] ss:$2 sm:$0xff]  ;;  %v805_v17 = vld [vmem:[#allocation2 + $0xa4] ss:$2 sm:$0xff] }
 0x27d   :  { %v801_v48 = vld [vmem:[#allocation2 + $0xa3] ss:$2 sm:$0xff]  ;;  %v2502_v55 = vpack.i.bf16 %v808_v47, %v807_v54 }
 0x27e   :  { %1015 = vst.msk [vmem:[#allocation2 + $0xa3] sm:$0x1] %vm708_vm3, %v2587_v1 }
 0x27f   :  { %2493 = vrot.lane.b32.xlu1 %v2492_v49, %s2588_s0 }
 0x280   :  { %v802_v56 = vld [vmem:[#allocation2 + $0xb3] ss:$2 sm:$0xff]  ;;  %v806_v58 = vld [vmem:[#allocation2 + $0xb4] ss:$2 sm:$0xff] }
 0x281   :  { %v2507_v57 = vpack.i.bf16 %v802_v56, %v801_v48  ;;  %v2512_v59 = vpack.i.bf16 %v806_v58, %v805_v17  ;;  %v809_v60 = vld [vmem:[#allocation2 + $0xa5] ss:$2 sm:$0xff]  ;;  %v810_v61 = vld [vmem:[#allocation2 + $0xb5] ss:$2 sm:$0xff]  ;;  %v797_v17 = vld [vmem:[#allocation2 + $0xa2] ss:$2 sm:$0xff] }
 0x282   :  { %v2517_v62 = vpack.i.bf16 %v810_v61, %v809_v60 }
 0x283   :  { %2498 = vrot.lane.b32.xlu1 %v2497_v53, %s2589_s16 }
 0x287   :  { %2503 = vrot.lane.b32.xlu1 %v2502_v55, %s2590_s23 }
 0x28b   :  { %2508 = vrot.lane.b32.xlu1 %v2507_v57, %s2588_s0 }
 0x28f   :  { %2513 = vrot.lane.b32.xlu1 %v2512_v59, %s2589_s16  ;;  %v798_v59 = vld [vmem:[#allocation2 + $0xb2] ss:$2 sm:$0xff] }
 0x293   :  { %2518 = vrot.lane.b32.xlu1 %v2517_v62, %s2590_s23 }
 0x2c5   :  { %v2464_v63 = vpop.permute.xlu1 %2463 }
 0x2c6   :  { %v2466_v51 = vunpack.i.h.bf16 %v2464_v63  ;;  %v2465_v2 = vunpack.i.l.bf16 %v2464_v63 }
 0x2c8   :  { %v783_v11 = vsel %vm14_vm0, %v719_v5, %v2465_v2  ;;  %v784_v12 = vsel %vm14_vm0, %v720_v6, %v2466_v51  ;;  %v1722_v5 = vld [vmem:[%s3309_s1 + $0x110] sm:$0xff] }
 0x2c9   :  { %v2469_v0 = vpop.permute.xlu1 %2468 }
 0x2ca   :  { %v2471_v52 = vunpack.i.h.bf16 %v2469_v0  ;;  %v2470_v3 = vunpack.i.l.bf16 %v2469_v0 }
 0x2cc   :  { %v787_v13 = vsel %vm316_vm4, %v783_v11, %v2470_v3  ;;  %v788_v14 = vsel %vm316_vm4, %v784_v12, %v2471_v52  ;;  %v1720_v3 = vld [vmem:[%s3309_s1 + $0x100] sm:$0xff]  ;;  %v1725_v12 = vld [vmem:[%s3309_s1 + $0x128] sm:$0xff] }
 0x2cd   :  { %v1724_v11 = vld [vmem:[%s3309_s1 + $0x120] sm:$0xff] }
 0x2d9   :  { %v2474_v4 = vpop.permute.xlu1 %2473 }
 0x2da   :  { %v2476_v8 = vunpack.i.h.bf16 %v2474_v4  ;;  %v2475_v10 = vunpack.i.l.bf16 %v2474_v4  ;;  %v1721_v4 = vld [vmem:[%s3309_s1 + $0x108] sm:$0xff] }
 0x2db   :  { %v2224_v6 = vpack.c.bf16 %v1721_v4, %v1720_v3 }
 0x2dc   :  { %v791_v15 = vsel %vm325_vm5, %v787_v13, %v2475_v10  ;;  %v792_v16 = vsel %vm325_vm5, %v788_v14, %v2476_v8  ;;  %v1723_v8 = vld [vmem:[%s3309_s1 + $0x118] sm:$0xff]  ;;  %v2232_v13 = vpack.c.bf16 %v1725_v12, %v1724_v11  ;;  %v1726_v14 = vld [vmem:[%s3309_s1 + $0x130] sm:$0xff] }
 0x2dd   :  { %2005 = vmatprep.mubr.f32.mxu1 %v791_v15  ;;  %v2228_v10 = vpack.c.bf16 %v1723_v8, %v1722_v5  ;;  %2225 = vmatprep.subr.bf16.mxu0 %v2224_v6  ;;  %v1727_v15 = vld [vmem:[%s3309_s1 + $0x138] sm:$0xff] }
 0x2de   :  { %2006 = vmatmul.mubr.f32.vlgmr.msra.gmra.mrb[0].mxu1 %v792_v16  ;;  %2227 = vmatpush3.bf16.msra.mxu0 %v2224_v6  ;;  %v2236_v16 = vpack.c.bf16 %v1727_v15, %v1726_v14 }
 0x2df   :  { %2229 = vmatprep.subr.bf16.mxu0 %v2228_v10 }
 0x2e2   :  { %2231 = vmatpush3.bf16.msra.mxu0 %v2228_v10 }
 0x2e3   :  { %2233 = vmatprep.subr.bf16.mxu0 %v2232_v13 }
 0x2e5   :  { %v2479_v18 = vpop.permute.xlu1 %2478 }
 0x2e6   :  { %v2481_v20 = vunpack.i.h.bf16 %v2479_v18  ;;  %v2480_v21 = vunpack.i.l.bf16 %v2479_v18  ;;  %v1728_v18 = vld [vmem:[%s3309_s1 + $0x140] sm:$0xff]  ;;  %2235 = vmatpush3.bf16.msra.mxu0 %v2232_v13 }
 0x2e7   :  { %2237 = vmatprep.subr.bf16.mxu0 %v2236_v16 }
 0x2e8   :  { %v785_v28 = vsel %vm14_vm0, %v721_v26, %v2480_v21  ;;  %v786_v32 = vsel %vm14_vm0, %v722_v7, %v2481_v20  ;;  %v1719_v21 = vld [vmem:[%s3310_s2 + $0x1] ss:$0 sm:$0xff] }
 0x2e9   :  { %v2484_v19 = vpop.permute.xlu1 %2483 }
 0x2ea   :  { %v2486_v22 = vunpack.i.h.bf16 %v2484_v19  ;;  %v2485_v23 = vunpack.i.l.bf16 %v2484_v19  ;;  %v1729_v19 = vld [vmem:[%s3309_s1 + $0x148] sm:$0xff]  ;;  %2239 = vmatpush3.bf16.msra.mxu0 %v2236_v16 }
 0x2eb   :  { %v2240_v20 = vpack.c.bf16 %v1729_v19, %v1728_v18 }
 0x2ec   :  { %v789_v33 = vsel %vm316_vm4, %v785_v28, %v2485_v23  ;;  %v790_v36 = vsel %vm316_vm4, %v786_v32, %v2486_v22 }
 0x2ed   :  { %v2489_v25 = vpop.permute.xlu1 %2488  ;;  %2241 = vmatprep.subr.bf16.mxu0 %v2240_v20 }
 0x2ee   :  { %v2491_v9 = vunpack.i.h.bf16 %v2489_v25  ;;  %v2490_v27 = vunpack.i.l.bf16 %v2489_v25  ;;  %2243 = vmatpush3.bf16.msra.mxu0 %v2240_v20 }
 0x2f0   :  { %v793_v37 = vsel %vm325_vm5, %v789_v33, %v2490_v27  ;;  %v794_v38 = vsel %vm325_vm5, %v790_v36, %v2491_v9  ;;  %v1730_v33 = vld [vmem:[%s3309_s1 + $0x150] sm:$0xff]  ;;  %v1731_v36 = vld [vmem:[%s3309_s1 + $0x158] sm:$0xff] }
 0x2f1   :  { %2008 = vmatprep.mubr.f32.mxu1 %v793_v37  ;;  %v2494_v39 = vpop.permute.xlu1 %2493 }
 0x2f2   :  { %2009 = vmatmul.mubr.f32.gmra.mrb[2].mxu1 %v794_v38  ;;  %v2496_v41 = vunpack.i.h.bf16 %v2494_v39  ;;  %v2495_v29 = vunpack.i.l.bf16 %v2494_v39  ;;  %v2244_v38 = vpack.c.bf16 %v1731_v36, %v1730_v33 }
 0x2f4   :  { %v859_v46 = vsel %vm14_vm0, %v795_v31, %v2495_v29  ;;  %v860_v35 = vsel %vm14_vm0, %v796_v30, %v2496_v41  ;;  %2245 = vmatprep.subr.bf16.mxu0 %v2244_v38  ;;  %v1732_v41 = vld [vmem:[%s3309_s1 + $0x160] sm:$0xff]  ;;  %v1733_v29 = vld [vmem:[%s3309_s1 + $0x168] sm:$0xff] }
 0x2f5   :  { %v2499_v40 = vpop.permute.xlu1 %2498  ;;  %2247 = vmatpush3.bf16.msra.mxu0 %v2244_v38 }
 0x2f6   :  { %v2501_v42 = vunpack.i.h.bf16 %v2499_v40  ;;  %v2500_v43 = vunpack.i.l.bf16 %v2499_v40 }
 0x2f8   :  { %v863_v47 = vsel %vm316_vm4, %v859_v46, %v2500_v43  ;;  %v864_v48 = vsel %vm316_vm4, %v860_v35, %v2501_v42  ;;  %v2248_v42 = vpack.c.bf16 %v1733_v29, %v1732_v41  ;;  %v1734_v43 = vld [vmem:[%s3309_s1 + $0x170] sm:$0xff] }
 0x2f9   :  { %v2504_v44 = vpop.permute.xlu1 %2503 }
 0x2fa   :  { %v2506_v34 = vunpack.i.h.bf16 %v2504_v44  ;;  %v2505_v45 = vunpack.i.l.bf16 %v2504_v44  ;;  %2249 = vmatprep.subr.bf16.mxu0 %v2248_v42  ;;  %v1735_v44 = vld [vmem:[%s3309_s1 + $0x178] sm:$0xff] }
 0x2fb   :  { %2251 = vmatpush3.bf16.msra.mxu0 %v2248_v42  ;;  %v2252_v31 = vpack.c.bf16 %v1735_v44, %v1734_v43 }
 0x2fc   :  { %v867_v49 = vsel %vm325_vm5, %v863_v47, %v2505_v45  ;;  %v868_v24 = vsel %vm325_vm5, %v864_v48, %v2506_v34 }
 0x2fd   :  { %v2509_v50 = vpop.permute.xlu1 %2508  ;;  %2011 = vmatprep.mubr.f32.mxu1 %v867_v49  ;;  %2253 = vmatprep.subr.bf16.mxu0 %v2252_v31 }
 0x2fe   :  { %2012 = vmatmul.mubr.f32.gmra.mrb[4].mxu1 %v868_v24  ;;  %v2511_v54 = vunpack.i.h.bf16 %v2509_v50  ;;  %v2510_v55 = vunpack.i.l.bf16 %v2509_v50 }
 0x2ff   :  { %2255 = vmatpush3.bf16.msra.mxu0 %v2252_v31 }
 0x300   :  { %v861_v62 = vsel %vm14_vm0, %v797_v17, %v2510_v55  ;;  %v862_v63 = vsel %vm14_vm0, %v798_v59, %v2511_v54 }
 0x301   :  { %v2514_v53 = vpop.permute.xlu1 %2513 }
 0x302   :  { %v2516_v56 = vunpack.i.h.bf16 %v2514_v53  ;;  %v2515_v57 = vunpack.i.l.bf16 %v2514_v53 }
 0x304   :  { %v865_v0 = vsel %vm316_vm4, %v861_v62, %v2515_v57  ;;  %v866_v51 = vsel %vm316_vm4, %v862_v63, %v2516_v56 }
 0x305   :  { %v2519_v58 = vpop.permute.xlu1 %2518 }
 0x306   :  { %v2521_v60 = vunpack.i.h.bf16 %v2519_v58  ;;  %v2520_v61 = vunpack.i.l.bf16 %v2519_v58 }
 0x308   :  { %v869_v2 = vsel %vm325_vm5, %v865_v0, %v2520_v61  ;;  %v870_v52 = vsel %vm325_vm5, %v866_v51, %v2521_v60 }
 0x309   :  { %2014 = vmatprep.mubr.f32.mxu1 %v869_v2 }
 0x30a   :  { %2015 = vmatmul.mubr.f32.gmra.mrb[6].mxu1 %v870_v52 }
 0x3b1   :  { %v2007_v22 = vpop.f32.mrb[0].mxu1 }
 0x3b2   :  { %v965_v23 = vadd.f32 %v2007_v22, %v1719_v21  ;;  %v959_v25 = vpop.f32.mrb[1].mxu1 }
 0x3b3   :  { %v960_v26 = vadd.f32 %v1719_v21, %v959_v25 }
 0x3b4   :  { %v999_v7 = vmax.f32 %v965_v23, 0.0 }
 0x3b5   :  { %v998_v9 = vmax.f32 %v960_v26, 0.0 }
 0x3b6   :  { %1007 = vst.msk [vmem:[#allocation2 + $0x9] sm:$0xff] %vm14_vm0, %v999_v7 }
 0x3b7   :  { %1006 = vst.msk [vmem:[#allocation2 + $0x1] sm:$0xff] %vm14_vm0, %v998_v9 }
 0x3be   :  { %v1018_v34 = vld [vmem:[#allocation2 + $0x1] ss:$2 sm:$0xff]  ;;  %v1020_v54 = vld [vmem:[#allocation2 + $0x2] ss:$2 sm:$0xff] }
 0x3bf   :  { %v1016_v18 = vld [vmem:[#allocation2] ss:$2 sm:$0xff] }
 0x3c5   :  { %v2010_v27 = vpop.f32.mrb[2].mxu1 }
 0x3c6   :  { %v975_v28 = vadd.f32 %v2010_v27, %v1719_v21  ;;  %v969_v32 = vpop.f32.mrb[3].mxu1 }
 0x3c7   :  { %v970_v37 = vadd.f32 %v1719_v21, %v969_v32 }
 0x3c8   :  { %v1001_v39 = vmax.f32 %v975_v28, 0.0 }
 0x3c9   :  { %v1000_v40 = vmax.f32 %v970_v37, 0.0 }
 0x3ca   :  { %1009 = vst.msk [vmem:[#allocation2 + $0x19] sm:$0xff] %vm14_vm0, %v1001_v39 }
 0x3cb   :  { %1008 = vst.msk [vmem:[#allocation2 + $0x11] sm:$0xff] %vm14_vm0, %v1000_v40 }
 0x3d1   :  { %v2013_v30 = vpop.f32.mrb[4].mxu1 }
 0x3d2   :  { %v985_v45 = vadd.f32 %v2013_v30, %v1719_v21  ;;  %v979_v46 = vpop.f32.mrb[5].mxu1  ;;  %v1019_v35 = vld [vmem:[#allocation2 + $0x11] ss:$2 sm:$0xff]  ;;  %v1021_v50 = vld [vmem:[#allocation2 + $0x12] ss:$2 sm:$0xff] }
 0x3d3   :  { %v1022_v47 = vld [vmem:[#allocation2 + $0x3] ss:$2 sm:$0xff]  ;;  %v980_v48 = vadd.f32 %v1719_v21, %v979_v46  ;;  %v2522_v49 = vpack.i.bf16 %v1019_v35, %v1018_v34  ;;  %v2527_v55 = vpack.i.bf16 %v1021_v50, %v1020_v54  ;;  %v1023_v56 = vld [vmem:[#allocation2 + $0x13] ss:$2 sm:$0xff]  ;;  %v1017_v15 = vld [vmem:[#allocation2 + $0x10] ss:$2 sm:$0xff] }
 0x3d4   :  { %1205 = vst.msk [vmem:[#allocation2 + $0x11] sm:$0x1] %vm708_vm3, %v2587_v1  ;;  %v1003_v24 = vmax.f32 %v985_v45, 0.0  ;;  %v2532_v57 = vpack.i.bf16 %v1023_v56, %v1022_v47  ;;  %v1737_v34 = vld [vmem:[%s3309_s1 + $0x180] sm:$0xff]  ;;  %v1738_v45 = vld [vmem:[%s3309_s1 + $0x188] sm:$0xff]  ;;  %v1739_v46 = vld [vmem:[%s3309_s1 + $0x190] sm:$0xff] }
 0x3d5   :  { %v1002_v53 = vmax.f32 %v980_v48, 0.0  ;;  %2523 = vrot.lane.b32.xlu1 %v2522_v49, %s2588_s0  ;;  %v2256_v35 = vpack.c.bf16 %v1738_v45, %v1737_v34  ;;  %v1740_v47 = vld [vmem:[%s3309_s1 + $0x198] sm:$0xff]  ;;  %v1741_v49 = vld [vmem:[%s3309_s1 + $0x1a0] sm:$0xff]  ;;  %v1755_v45 = vld [vmem:[%s3309_s1 + $0x208] sm:$0xff] }
 0x3d6   :  { %1012 = vst.msk [vmem:[#allocation2 + $0x8b] sm:$0xff] %vm14_vm0, %v1003_v24  ;;  %v2260_v48 = vpack.c.bf16 %v1740_v47, %v1739_v46  ;;  %v1742_v24 = vld [vmem:[%s3309_s1 + $0x1a8] sm:$0xff]  ;;  %v1744_v54 = vld [vmem:[%s3309_s1 + $0x1b8] sm:$0xff]  ;;  %v1745_v56 = vld [vmem:[%s3309_s1 + $0x1c0] sm:$0xff] }
 0x3d7   :  { %1011 = vst.msk [vmem:[#allocation2 + $0x83] sm:$0xff] %vm14_vm0, %v1002_v53  ;;  %2257 = vmatprep.subr.bf16.mxu1 %v2256_v35  ;;  %v2264_v50 = vpack.c.bf16 %v1742_v24, %v1741_v49  ;;  %v1743_v53 = vld [vmem:[%s3309_s1 + $0x1b0] sm:$0xff]  ;;  %v1754_v34 = vld [vmem:[%s3309_s1 + $0x200] sm:$0xff] }
 0x3d8   :  { %2259 = vmatpush3.bf16.msra.mxu1 %v2256_v35  ;;  %v1756_v46 = vld [vmem:[%s3309_s1 + $0x210] sm:$0xff]  ;;  %v2591_v35 = vmov 0.0|0.0   ;;  %v2289_v47 = vpack.c.bf16 %v1755_v45, %v1754_v34  ;;  %v1758_v24 = vld [vmem:[%s3309_s1 + $0x220] sm:$0xff]  ;;  %v1776_v45 = vld [vmem:[%s3309_s1 + $0x2a8] sm:$0xff] }
 0x3d9   :  { %2528 = vrot.lane.b32.xlu1 %v2527_v55, %s2589_s16  ;;  %2261 = vmatprep.subr.bf16.mxu1 %v2260_v48  ;;  %v2268_v55 = vpack.c.bf16 %v1744_v54, %v1743_v53  ;;  %v1760_v54 = vld [vmem:[%s3309_s1 + $0x230] sm:$0xff]  ;;  %v1775_v34 = vld [vmem:[%s3309_s1 + $0x2a0] sm:$0xff] }
 0x3da   :  { %2288 = vmatprep.subr.bf16.mxu0 %v2591_v35 }
 0x3dc   :  { %2263 = vmatpush3.bf16.msra.mxu1 %v2260_v48  ;;  %v1757_v48 = vld [vmem:[%s3309_s1 + $0x218] sm:$0xff] }
 0x3dd   :  { %2533 = vrot.lane.b32.xlu1 %v2532_v57, %s2590_s23  ;;  %v2016_v58 = vpop.f32.mrb[6].mxu1  ;;  %2265 = vmatprep.subr.bf16.mxu1 %v2264_v50  ;;  %v1746_v57 = vld [vmem:[%s3309_s1 + $0x1c8] sm:$0xff]  ;;  %v2292_v49 = vpack.c.bf16 %v1757_v48, %v1756_v46  ;;  %v2319_v46 = vpack.c.bf16 %v1776_v45, %v1775_v34  ;;  %v1778_v48 = vld [vmem:[%s3309_s1 + $0x2b8] sm:$0xff] }
 0x3de   :  { %v995_v17 = vadd.f32 %v2016_v58, %v1719_v21  ;;  %v989_v59 = vpop.f32.mrb[7].mxu1  ;;  %v1056_v63 = vld [vmem:[#allocation2 + $0x83] ss:$2 sm:$0xff]  ;;  %v1058_v3 = vld [vmem:[#allocation2 + $0x84] ss:$2 sm:$0xff]  ;;  %v2272_v58 = vpack.c.bf16 %v1746_v57, %v1745_v56 }
 0x3df   :  { %v990_v60 = vadd.f32 %v1719_v21, %v989_v59  ;;  %v1054_v38 = vld [vmem:[#allocation2 + $0x82] ss:$2 sm:$0xff]  ;;  %v1748_v59 = vld [vmem:[%s3309_s1 + $0x1d8] sm:$0xff] }
 0x3e0   :  { %v1005_v61 = vmax.f32 %v995_v17, 0.0  ;;  %2267 = vmatpush3.bf16.msra.mxu1 %v2264_v50  ;;  %v1747_v17 = vld [vmem:[%s3309_s1 + $0x1d0] sm:$0xff]  ;;  %v1759_v50 = vld [vmem:[%s3309_s1 + $0x228] sm:$0xff]  ;;  %v1762_v57 = vld [vmem:[%s3309_s1 + $0x240] sm:$0xff] }
 0x3e1   :  { %v1004_v62 = vmax.f32 %v990_v60, 0.0  ;;  %2269 = vmatprep.subr.bf16.mxu1 %v2268_v55  ;;  %v2276_v60 = vpack.c.bf16 %v1748_v59, %v1747_v17  ;;  %v2295_v53 = vpack.c.bf16 %v1759_v50, %v1758_v24  ;;  %v1764_v59 = vld [vmem:[%s3309_s1 + $0x250] sm:$0xff]  ;;  %v1779_v24 = vld [vmem:[%s3309_s1 + $0x2c0] sm:$0xff]  ;;  %v1780_v50 = vld [vmem:[%s3309_s1 + $0x2c8] sm:$0xff] }
 0x3e2   :  { %1014 = vst.msk [vmem:[#allocation2 + $0x9b] sm:$0xff] %vm14_vm0, %v1005_v61  ;;  %v1736_v61 = vld [vmem:[%s3310_s2 + $0x2] ss:$0 sm:$0xff] }
 0x3e3   :  { %1013 = vst.msk [vmem:[#allocation2 + $0x93] sm:$0xff] %vm14_vm0, %v1004_v62 }
 0x3e4   :  { %2271 = vmatpush3.bf16.msra.mxu1 %v2268_v55  ;;  %v1761_v55 = vld [vmem:[%s3309_s1 + $0x238] sm:$0xff] }
 0x3e5   :  { %2273 = vmatprep.subr.bf16.mxu1 %v2272_v58  ;;  %v2298_v56 = vpack.c.bf16 %v1761_v55, %v1760_v54  ;;  %v1781_v54 = vld [vmem:[%s3309_s1 + $0x2d0] sm:$0xff]  ;;  %v1782_v55 = vld [vmem:[%s3309_s1 + $0x2d8] sm:$0xff] }
 0x3e8   :  { %2275 = vmatpush3.bf16.msra.mxu1 %v2272_v58  ;;  %v1763_v58 = vld [vmem:[%s3309_s1 + $0x248] sm:$0xff] }
 0x3e9   :  { %2277 = vmatprep.subr.bf16.mxu1 %v2276_v60  ;;  %v2301_v17 = vpack.c.bf16 %v1763_v58, %v1762_v57  ;;  %v1770_v57 = vld [vmem:[%s3310_s2 + $0x4] ss:$0 sm:$0xff] }
 0x3ea   :  { %v1057_v0 = vld [vmem:[#allocation2 + $0x93] ss:$2 sm:$0xff]  ;;  %v1059_v52 = vld [vmem:[#allocation2 + $0x94] ss:$2 sm:$0xff] }
 0x3eb   :  { %v1060_v51 = vld [vmem:[#allocation2 + $0x85] ss:$2 sm:$0xff]  ;;  %v2537_v2 = vpack.i.bf16 %v1057_v0, %v1056_v63  ;;  %v2542_v4 = vpack.i.bf16 %v1059_v52, %v1058_v3  ;;  %v1061_v5 = vld [vmem:[#allocation2 + $0x95] ss:$2 sm:$0xff]  ;;  %v1055_v39 = vld [vmem:[#allocation2 + $0x92] ss:$2 sm:$0xff] }
 0x3ec   :  { %1208 = vst.msk [vmem:[#allocation2 + $0x93] sm:$0x1] %vm708_vm3, %v2587_v1  ;;  %v2547_v6 = vpack.i.bf16 %v1061_v5, %v1060_v51  ;;  %2279 = vmatpush3.bf16.msra.mxu1 %v2276_v60  ;;  %v1765_v60 = vld [vmem:[%s3309_s1 + $0x258] sm:$0xff] }
 0x3ed   :  { %2538 = vrot.lane.b32.xlu1 %v2537_v2, %s2588_s0 }
 0x3f1   :  { %2543 = vrot.lane.b32.xlu1 %v2542_v4, %s2589_s16 }
 0x3f5   :  { %2548 = vrot.lane.b32.xlu1 %v2547_v6, %s2590_s23 }
 0x447   :  { %v2524_v8 = vpop.permute.xlu1 %2523 }
 0x448   :  { %v2526_v11 = vunpack.i.h.bf16 %v2524_v8  ;;  %v2525_v12 = vunpack.i.l.bf16 %v2524_v8 }
 0x44a   :  { %v1049_v19 = vsel %vm14_vm0, %v1017_v15, %v2526_v11  ;;  %v1048_v22 = vsel %vm14_vm0, %v1016_v18, %v2525_v12  ;;  %v1750_v11 = vld [vmem:[%s3309_s1 + $0x1e8] sm:$0xff]  ;;  %v1752_v18 = vld [vmem:[%s3309_s1 + $0x1f8] sm:$0xff] }
 0x44b   :  { %v2529_v10 = vpop.permute.xlu1 %2528 }
 0x44c   :  { %v2531_v13 = vunpack.i.h.bf16 %v2529_v10  ;;  %v2530_v14 = vunpack.i.l.bf16 %v2529_v10  ;;  %v1749_v10 = vld [vmem:[%s3309_s1 + $0x1e0] sm:$0xff] }
 0x44e   :  { %v1051_v23 = vsel %vm316_vm4, %v1049_v19, %v2531_v13  ;;  %v1050_v25 = vsel %vm316_vm4, %v1048_v22, %v2530_v14  ;;  %v2280_v13 = vpack.c.bf16 %v1750_v11, %v1749_v10  ;;  %v1769_v10 = vld [vmem:[%s3309_s1 + $0x278] sm:$0xff] }
 0x44f   :  { %v2534_v16 = vpop.permute.xlu1 %2533 }
 0x450   :  { %v2536_v20 = vunpack.i.h.bf16 %v2534_v16  ;;  %v2535_v21 = vunpack.i.l.bf16 %v2534_v16  ;;  %2281 = vmatprep.subr.bf16.mxu1 %v2280_v13  ;;  %v1751_v16 = vld [vmem:[%s3309_s1 + $0x1f0] sm:$0xff] }
 0x451   :  { %2283 = vmatpush3.bf16.msra.mxu1 %v2280_v13  ;;  %v2284_v19 = vpack.c.bf16 %v1752_v18, %v1751_v16 }
 0x452   :  { %v1052_v26 = vsel %vm325_vm5, %v1050_v25, %v2535_v21  ;;  %v1053_v7 = vsel %vm325_vm5, %v1051_v23, %v2536_v20 }
 0x453   :  { %2049 = vmatprep.mubr.f32.mxu0 %v1052_v26  ;;  %2285 = vmatprep.subr.bf16.mxu1 %v2284_v19 }
 0x454   :  { %2050 = vmatmul.mubr.f32.vlgmr.msra.gmra.mrb[16].mxu0 %v1053_v7 }
 0x455   :  { %2287 = vmatpush3.bf16.msra.mxu1 %v2284_v19  ;;  %2290 = vmatpush3.bf16.msra.mxu0 %v2289_v47  ;;  %v1777_v47 = vld [vmem:[%s3309_s1 + $0x2b0] sm:$0xff] }
 0x456   :  { %2312 = vmatprep.subr.bf16.mxu1 %v2591_v35  ;;  %2291 = vmatprep.subr.bf16.mxu0 %v2591_v35 }
 0x459   :  { %2293 = vmatpush3.bf16.msra.mxu0 %v2292_v49  ;;  %v2322_v49 = vpack.c.bf16 %v1778_v48, %v1777_v47 }
 0x45a   :  { %2294 = vmatprep.subr.bf16.mxu0 %v2591_v35 }
 0x45d   :  { %2296 = vmatpush3.bf16.msra.mxu0 %v2295_v53  ;;  %v2325_v53 = vpack.c.bf16 %v1780_v50, %v1779_v24 }
 0x45e   :  { %2297 = vmatprep.subr.bf16.mxu0 %v2591_v35 }
 0x45f   :  { %v2539_v9 = vpop.permute.xlu1 %2538 }
 0x460   :  { %v2541_v28 = vunpack.i.h.bf16 %v2539_v9  ;;  %v2540_v32 = vunpack.i.l.bf16 %v2539_v9 }
 0x461   :  { %2299 = vmatpush3.bf16.msra.mxu0 %v2298_v56  ;;  %v2328_v56 = vpack.c.bf16 %v1782_v55, %v1781_v54 }
 0x462   :  { %v1086_v29 = vsel %vm14_vm0, %v1054_v38, %v2540_v32  ;;  %v1087_v42 = vsel %vm14_vm0, %v1055_v39, %v2541_v28  ;;  %2300 = vmatprep.subr.bf16.mxu0 %v2591_v35 }
 0x463   :  { %v2544_v27 = vpop.permute.xlu1 %2543 }
 0x464   :  { %v2546_v33 = vunpack.i.h.bf16 %v2544_v27  ;;  %v2545_v36 = vunpack.i.l.bf16 %v2544_v27 }
 0x465   :  { %2302 = vmatpush3.bf16.msra.mxu0 %v2301_v17 }
 0x466   :  { %v1088_v43 = vsel %vm316_vm4, %v1086_v29, %v2545_v36  ;;  %v1089_v44 = vsel %vm316_vm4, %v1087_v42, %v2546_v33  ;;  %2303 = vmatprep.subr.bf16.mxu0 %v2591_v35 }
 0x467   :  { %v2549_v37 = vpop.permute.xlu1 %2548 }
 0x468   :  { %v2551_v40 = vunpack.i.h.bf16 %v2549_v37  ;;  %v2550_v41 = vunpack.i.l.bf16 %v2549_v37 }
 0x46a   :  { %v1090_v31 = vsel %vm325_vm5, %v1088_v43, %v2550_v41  ;;  %v1091_v30 = vsel %vm325_vm5, %v1089_v44, %v2551_v40 }
 0x46b   :  { %2052 = vmatprep.mubr.f32.mxu0 %v1090_v31 }
 0x46c   :  { %2053 = vmatmul.mubr.f32.gmra.mrb[18].mxu0 %v1091_v30 }
 0x46d   :  { %2122 = vmatprep.mubr.msk.f32.mxu0 %vm2592_vm6, %v2587_v1 }
 0x527   :  { %v2051_v62 = vpop.f32.mrb[16].mxu0 }
 0x528   :  { %v1186_v63 = vadd.f32 %v2051_v62, %v1736_v61  ;;  %v1180_v0 = vpop.f32.mrb[17].mxu0  ;;  %v1753_v62 = vld [vmem:[%s3310_s2 + $0x3] ss:$0 sm:$0xff] }
 0x529   :  { %v1181_v51 = vadd.f32 %v1736_v61, %v1180_v0 }
 0x52a   :  { %v1200_v2 = vmax.f32 %v1186_v63, 0.0 }
 0x52b   :  { %v1199_v52 = vmax.f32 %v1181_v51, 0.0 }
 0x52c   :  { %1204 = vst.msk [vmem:[#allocation2 + $0x9] sm:$0xff] %vm14_vm0, %v1200_v2 }
 0x52d   :  { %1203 = vst.msk [vmem:[#allocation2 + $0x1] sm:$0xff] %vm14_vm0, %v1199_v52 }
 0x534   :  { %v1210_v3 = vld [vmem:[#allocation2 + $0x1] ss:$2 sm:$0xff]  ;;  %v1211_v20 = vld [vmem:[#allocation2 + $0x2] ss:$2 sm:$0xff] }
 0x535   :  { %v1212_v4 = vld [vmem:[#allocation2 + $0x3] ss:$2 sm:$0xff]  ;;  %v1209_v38 = vld [vmem:[#allocation2] ss:$2 sm:$0xff] }
 0x536   :  { %1347 = vst.msk [vmem:[#allocation2 + $0x9] sm:$0x1] %vm708_vm3, %v2587_v1 }
 0x53f   :  { %v2054_v5 = vpop.f32.mrb[18].mxu0 }
 0x540   :  { %v1196_v6 = vadd.f32 %v2054_v5, %v1736_v61  ;;  %v1190_v8 = vpop.f32.mrb[19].mxu0 }
 0x541   :  { %v1191_v12 = vadd.f32 %v1736_v61, %v1190_v8  ;;  %v2304_v61 = vpack.c.bf16 %v1765_v60, %v1764_v59  ;;  %v1768_v8 = vld [vmem:[%s3309_s1 + $0x270] sm:$0xff] }
 0x542   :  { %v1202_v14 = vmax.f32 %v1196_v6, 0.0  ;;  %v2310_v11 = vpack.c.bf16 %v1769_v10, %v1768_v8 }
 0x543   :  { %v1201_v15 = vmax.f32 %v1191_v12, 0.0  ;;  %2305 = vmatpush3.bf16.msra.mxu0 %v2304_v61  ;;  %v1783_v61 = vld [vmem:[%s3309_s1 + $0x2e0] sm:$0xff] }
 0x544   :  { %1207 = vst.msk [vmem:[#allocation2 + $0x8b] sm:$0xff] %vm14_vm0, %v1202_v14  ;;  %2306 = vmatprep.subr.bf16.mxu0 %v2591_v35 }
 0x545   :  { %1206 = vst.msk [vmem:[#allocation2 + $0x83] sm:$0xff] %vm14_vm0, %v1201_v15 }
 0x54c   :  { %v1230_v21 = vld [vmem:[#allocation2 + $0x84] ss:$2 sm:$0xff]  ;;  %v1229_v22 = vld [vmem:[#allocation2 + $0x83] ss:$2 sm:$0xff] }
 0x54d   :  { %v1231_v23 = vld [vmem:[#allocation2 + $0x85] ss:$2 sm:$0xff]  ;;  %v2557_v25 = vpack.i.bf16 %v1230_v21, %v1211_v20  ;;  %v2552_v26 = vpack.i.bf16 %v1229_v22, %v1210_v3  ;;  %v1228_v37 = vld [vmem:[#allocation2 + $0x82] ss:$2 sm:$0xff] }
 0x54e   :  { %1349 = vst.msk [vmem:[#allocation2 + $0x8b] sm:$0x1] %vm708_vm3, %v2587_v1  ;;  %v2562_v7 = vpack.i.bf16 %v1231_v23, %v1212_v4  ;;  %v1766_v3 = vld [vmem:[%s3309_s1 + $0x260] sm:$0xff]  ;;  %v1767_v4 = vld [vmem:[%s3309_s1 + $0x268] sm:$0xff] }
 0x54f   :  { %2558 = vrot.lane.b32.xlu0 %v2557_v25, %s2589_s16  ;;  %2553 = vrot.lane.b32.xlu1 %v2552_v26, %s2588_s0  ;;  %v2307_v6 = vpack.c.bf16 %v1767_v4, %v1766_v3 }
 0x551   :  { %2308 = vmatpush3.bf16.msra.mxu0 %v2307_v6 }
 0x552   :  { %2309 = vmatprep.subr.bf16.mxu0 %v2591_v35 }
 0x553   :  { %2563 = vrot.lane.b32.xlu1 %v2562_v7, %s2590_s23 }
 0x555   :  { %2311 = vmatpush3.bf16.msra.mxu0 %v2310_v11 }
 0x5c1   :  { %v2559_v9 = vpop.permute.xlu0 %2558  ;;  %v2554_v27 = vpop.permute.xlu1 %2553 }
 0x5c2   :  { %v2556_v28 = vunpack.i.h.bf16 %v2554_v27  ;;  %v2555_v32 = vunpack.i.l.bf16 %v2554_v27  ;;  %v2561_v33 = vunpack.i.h.bf16 %v2559_v9  ;;  %v2560_v36 = vunpack.i.l.bf16 %v2559_v9 }
 0x5c4   :  { %v1244_v39 = vsel %vm14_vm0, %v1228_v37, %v2556_v28  ;;  %v1225_v40 = vsel %vm14_vm0, %v1209_v38, %v2555_v32 }
 0x5c5   :  { %v2564_v41 = vpop.permute.xlu1 %2563  ;;  %v1226_v43 = vsel %vm316_vm4, %v1225_v40, %v2560_v36  ;;  %v1245_v44 = vsel %vm316_vm4, %v1244_v39, %v2561_v33 }
 0x5c6   :  { %v2566_v29 = vunpack.i.h.bf16 %v2564_v41  ;;  %v2565_v42 = vunpack.i.l.bf16 %v2564_v41 }
 0x5c8   :  { %v1227_v31 = vsel %vm325_vm5, %v1226_v43, %v2565_v42  ;;  %v1246_v30 = vsel %vm325_vm5, %v1245_v44, %v2566_v29  ;;  %v1771_v29 = vld [vmem:[%s3309_s1 + $0x280] sm:$0xff]  ;;  %v1772_v42 = vld [vmem:[%s3309_s1 + $0x288] sm:$0xff]  ;;  %v1773_v43 = vld [vmem:[%s3309_s1 + $0x290] sm:$0xff] }
 0x5c9   :  { %2087 = vmatprep.mubr.f32.mxu1 %v1227_v31  ;;  %v2313_v44 = vpack.c.bf16 %v1772_v42, %v1771_v29  ;;  %v1774_v31 = vld [vmem:[%s3309_s1 + $0x298] sm:$0xff] }
 0x5ca   :  { %2088 = vmatmul.mubr.f32.vlgmr.msra.gmra.mrb[8].mxu1 %v1246_v30  ;;  %v2316_v30 = vpack.c.bf16 %v1774_v31, %v1773_v43 }
 0x5cb   :  { %2157 = vmatprep.mubr.msk.f32.mxu1 %vm2592_vm6, %v2587_v1  ;;  %2314 = vmatpush3.bf16.msra.mxu1 %v2313_v44 }
 0x5cc   :  { %2315 = vmatprep.subr.bf16.mxu1 %v2591_v35 }
 0x5cf   :  { %2317 = vmatpush3.bf16.msra.mxu1 %v2316_v30 }
 0x5d0   :  { %2318 = vmatprep.subr.bf16.mxu1 %v2591_v35 }
 0x5d3   :  { %2320 = vmatpush3.bf16.msra.mxu1 %v2319_v46 }
 0x5d4   :  { %2321 = vmatprep.subr.bf16.mxu1 %v2591_v35 }
 0x5d7   :  { %2323 = vmatpush3.bf16.msra.mxu1 %v2322_v49 }
 0x5d8   :  { %2324 = vmatprep.subr.bf16.mxu1 %v2591_v35 }
 0x5db   :  { %2326 = vmatpush3.bf16.msra.mxu1 %v2325_v53 }
 0x5dc   :  { %2327 = vmatprep.subr.bf16.mxu1 %v2591_v35 }
 0x5df   :  { %2329 = vmatpush3.bf16.msra.mxu1 %v2328_v56 }
 0x5e0   :  { %2330 = vmatprep.subr.bf16.mxu1 %v2591_v35 }
 0x69d   :  { %v2089_v63 = vpop.f32.mrb[8].mxu1 }
 0x69e   :  { %v1341_v0 = vadd.f32 %v2089_v63, %v1753_v62  ;;  %v1335_v51 = vpop.f32.mrb[9].mxu1 }
 0x69f   :  { %v1336_v2 = vadd.f32 %v1753_v62, %v1335_v51  ;;  %v1784_v62 = vld [vmem:[%s3309_s1 + $0x2e8] sm:$0xff]  ;;  %v1786_v51 = vld [vmem:[%s3309_s1 + $0x2f8] sm:$0xff] }
 0x6a0   :  { %v1345_v52 = vmax.f32 %v1341_v0, 0.0  ;;  %v2331_v63 = vpack.c.bf16 %v1784_v62, %v1783_v61  ;;  %v1785_v0 = vld [vmem:[%s3309_s1 + $0x2f0] sm:$0xff] }
 0x6a1   :  { %v1344_v5 = vmax.f32 %v1336_v2, 0.0  ;;  %v2334_v2 = vpack.c.bf16 %v1786_v51, %v1785_v0 }
 0x6a2   :  { %1348 = vst.msk [vmem:[#allocation2 + $0x83] sm:$0xff] %vm14_vm0, %v1345_v52  ;;  %2332 = vmatpush3.bf16.msra.mxu1 %v2331_v63 }
 0x6a3   :  { %1346 = vst.msk [vmem:[#allocation2 + $0x1] sm:$0xff] %vm14_vm0, %v1344_v5  ;;  %2333 = vmatprep.subr.bf16.mxu1 %v2591_v35 }
 0x6a6   :  { %2335 = vmatpush3.bf16.msra.mxu1 %v2334_v2 }
 0x6a9   :  { %v1371_v12 = vld [vmem:[#allocation2 + $0x84] ss:$2 sm:$0xf]  ;;  %v1370_v13 = vld [vmem:[#allocation2 + $0x83] ss:$2 sm:$0xf] }
 0x6aa   :  { %v1352_v14 = vld [vmem:[#allocation2 + $0x2] ss:$2 sm:$0xf]  ;;  %v1351_v15 = vld [vmem:[#allocation2 + $0x1] ss:$2 sm:$0xf] }
 0x6ab   :  { %v2572_v16 = vpack.i.bf16 %v1352_v14, %v1371_v12  ;;  %v2567_v18 = vpack.i.bf16 %v1351_v15, %v1370_v13  ;;  %v1353_v19 = vld [vmem:[#allocation2 + $0x3] ss:$2 sm:$0xf]  ;;  %v1350_v9 = vld [vmem:[#allocation2] ss:$2 sm:$0xf] }
 0x6ac   :  { %v1372_v20 = vld [vmem:[#allocation2 + $0x85] ss:$2 sm:$0xf]  ;;  %1487 = vst.msk [vmem:[#allocation2 + $0x5] sm:$0x1] %vm708_vm3, %v2587_v1 }
 0x6ad   :  { %1490 = vst.msk [vmem:[#allocation2 + $0x87] sm:$0x1] %vm708_vm3, %v2587_v1  ;;  %2573 = vrot.lane.b32.xlu1 %v2572_v16, %s2589_s16  ;;  %2568 = vrot.lane.b32.xlu0 %v2567_v18, %s2588_s0  ;;  %v1369_v27 = vld [vmem:[#allocation2 + $0x82] ss:$2 sm:$0xf] }
 0x6b1   :  { %1363 = vrot.lane.b32.xlu1 %v1353_v19, %s2590_s23  ;;  %1382 = vrot.lane.b32.xlu0 %v1372_v20, %s2590_s23 }
 0x71f   :  { %v2574_v21 = vpop.permute.xlu1 %2573  ;;  %v2569_v22 = vpop.permute.xlu0 %2568 }
 0x720   :  { %v2576_v23 = vunpack.i.h.bf16 %v2574_v21  ;;  %v2575_v25 = vunpack.i.l.bf16 %v2574_v21  ;;  %v2571_v26 = vunpack.i.h.bf16 %v2569_v22  ;;  %v2570_v7 = vunpack.i.l.bf16 %v2569_v22 }
 0x722   :  { %v1366_v28 = vsel %vm14_vm0, %v1350_v9, %v2571_v26  ;;  %v1385_v1 = vsel %vm14_vm0, %v1369_v27, %v2570_v7 }
 0x723   :  { %v1364_v32 = vpop.permute.xlu1 %1363  ;;  %v1367_v33 = vsel %vm316_vm4, %v1366_v28, %v2576_v23  ;;  %v1383_v36 = vpop.permute.xlu0 %1382  ;;  %v1386_v37 = vsel %vm316_vm4, %v1385_v1, %v2575_v25  ;;  %v1787_v1 = vld [vmem:[%s3310_s2 + $0x5] ss:$0 sm:$0xff] }
 0x724   :  { %v1387_v38 = vsel %vm325_vm5, %v1386_v37, %v1383_v36  ;;  %v1368_v40 = vsel %vm325_vm5, %v1367_v33, %v1364_v32 }
 0x725   :  { %v1389_v39 = vrot.slane %v1387_v38, 4 }
 0x727   :  { %v1392_v41 = vsel %vm1391_vm7, %v1368_v40, %v1389_v39 }
 0x728   :  { %2123 = vmatmul.mubr.f32.vlgmr.msra.gmra.mrb[20].mxu0 %v1392_v41 }
 0x7fb   :  { %v1481_v58 = vpop.f32.mrb[20].mxu0 }
 0x7fc   :  { %v1482_v17 = vadd.f32 %v1770_v57, %v1481_v58  ;;  %v2124_v59 = vpop.f32.mrb[21].mxu0 }
 0x7fe   :  { %v1485_v60 = vmax.f32 %v1482_v17, 0.0 }
 0x800   :  { %1486 = vst.msk [vmem:[#allocation2 + $0x1] sm:$0xf] %vm47_vm2, %v1485_v60 }
 0x801   :  { %1489 = vst.msk [vmem:[#allocation2 + $0x7f] sm:$0xf0] %vm1488_vm8, %v1485_v60 }
 0x807   :  { %v1493_v52 = vld [vmem:[#allocation2 + $0x2] ss:$2 sm:$0x3]  ;;  %v1492_v5 = vld [vmem:[#allocation2 + $0x1] ss:$2 sm:$0x3] }
 0x808   :  { %v1512_v3 = vld [vmem:[#allocation2 + $0x84] ss:$2 sm:$0x3]  ;;  %v1511_v6 = vld [vmem:[#allocation2 + $0x83] ss:$2 sm:$0x3] }
 0x809   :  { %v2582_v4 = vpack.i.bf16 %v1493_v52, %v1512_v3  ;;  %v2577_v8 = vpack.i.bf16 %v1492_v5, %v1511_v6  ;;  %v1494_v35 = vld [vmem:[#allocation2 + $0x3] ss:$2 sm:$0x3]  ;;  %v1491_v18 = vld [vmem:[#allocation2] ss:$2 sm:$0x3] }
 0x80a   :  { %v1513_v10 = vld [vmem:[#allocation2 + $0x85] ss:$2 sm:$0x3]  ;;  %v1510_v19 = vld [vmem:[#allocation2 + $0x82] ss:$2 sm:$0x3] }
 0x80b   :  { %2583 = vrot.lane.b32.xlu1 %v2582_v4, %s2589_s16  ;;  %2578 = vrot.lane.b32.xlu0 %v2577_v8, %s2588_s0 }
 0x80f   :  { %1504 = vrot.lane.b32.xlu1 %v1494_v35, %s2590_s23  ;;  %1523 = vrot.lane.b32.xlu0 %v1513_v10, %s2590_s23 }
 0x87d   :  { %v2584_v11 = vpop.permute.xlu1 %2583  ;;  %v2579_v14 = vpop.permute.xlu0 %2578 }
 0x87e   :  { %v2586_v12 = vunpack.i.h.bf16 %v2584_v11  ;;  %v2585_v13 = vunpack.i.l.bf16 %v2584_v11  ;;  %v2581_v15 = vunpack.i.h.bf16 %v2579_v14  ;;  %v2580_v16 = vunpack.i.l.bf16 %v2579_v14 }
 0x880   :  { %v1507_v20 = vsel %vm14_vm0, %v1491_v18, %v2581_v15  ;;  %v1526_v21 = vsel %vm14_vm0, %v1510_v19, %v2580_v16 }
 0x881   :  { %v1505_v22 = vpop.permute.xlu1 %1504  ;;  %v1508_v23 = vsel %vm316_vm4, %v1507_v20, %v2586_v12  ;;  %v1524_v25 = vpop.permute.xlu0 %1523  ;;  %v1527_v26 = vsel %vm316_vm4, %v1526_v21, %v2585_v13 }
 0x882   :  { %v1528_v7 = vsel %vm325_vm5, %v1527_v26, %v1524_v25  ;;  %v1509_v27 = vsel %vm325_vm5, %v1508_v23, %v1505_v22 }
 0x883   :  { %v1530_v9 = vrot.slane %v1528_v7, 6 }
 0x885   :  { %v1533_v28 = vsel %vm1532_vm9, %v1509_v27, %v1530_v9 }
 0x886   :  { %2158 = vmatmul.mubr.f32.vlgmr.msra.gmra.mrb[10].mxu1 %v1533_v28 }
 0x959   :  { %v1622_v32 = vpop.f32.mrb[10].mxu1 }
 0x95a   :  { %v1623_v33 = vadd.f32 %v1787_v1, %v1622_v32  ;;  %v2159_v36 = vpop.f32.mrb[11].mxu1 }
 0x95c   :  { %1626 = vxpose.xlu0.b32.start.end [1/1] (short) (narrow) %v1623_v33, 8  ;;  %v1661_v37 = vrot.slane %v1623_v33, 2 }
 0x95e   :  { %1663 = vxpose.xlu1.b32.start.end [1/1] (short) (narrow) %v1661_v37, 8 }
 0x9dc   :  { %v1642_v38 = vpop.trf.xlu0 }
 0x9dd   :  { %1659 = vst.msk [vmem:[%s3311_s3] sm:$0xff] %vm1658_vm10, %v1642_v38 }
 0x9de   :  { %v1679_v39 = vpop.trf.xlu1 }
 0x9df   :  { %1788 = vst.msk [vmem:[%s3311_s3 + $0x8] sm:$0xff] %vm1658_vm10, %v1679_v39 }

</bundles_post_ra>
